<compile_context>
chip_gen: v5e
topology: v5e:2x2
jax: 0.10.0
libtpu: 0.0.40
codegen_flags: <defaults>
</compile_context>

<pallas_src>
import functools

import jax
import jax.numpy as jnp
from jax import lax
from jax.experimental import pallas as pl
from jax.experimental.pallas import tpu as pltpu


def _capsule_kernel(x_ref, w_ref, v_ref, *, num_routing, eps):
    """Dynamic routing for one batch tile.

    x_ref: (TB, D_in, I)        input capsules, I = in_capsules on lanes
    w_ref: (D_in, J, D_out, I)  transformation matrices, I on lanes
    v_ref: (TB, J, D_out)       output capsules
    """
    x = x_ref[...]                                  # (TB, D_in, I) -- tiny
    TB, D_in, I = x.shape
    _, J, D_out, _ = w_ref.shape

    # u_hat[b, j, d, i] = sum_k W[k, j, d, i] * x[b, k, i]
    # Unrolled accumulation over D_in: never materializes a 5-D temp; each
    # w_ref[k] is a contiguous (J, D_out, I) block straight from VMEM.
    u_hat = None
    for k in range(D_in):
        term = w_ref[k][None, :, :, :] * x[:, k, :][:, None, None, :]
        u_hat = term if u_hat is None else u_hat + term        # (TB, J, D_out, I)

    b_ij = None                                     # routing logits (TB, J, I)
    v = None
    for r in range(num_routing):                    # unrolled (3 iterations)
        if r == 0:
            # softmax of the all-zero initial logits is exactly uniform.
            c = jnp.full((TB, J, I), 1.0 / J, dtype=jnp.float32)
        else:
            mx = jnp.max(b_ij, axis=1, keepdims=True)          # sublane reduce
            e = jnp.exp(b_ij - mx)                             # EUP
            c = e * pl.reciprocal(jnp.sum(e, axis=1, keepdims=True), approx=True)

        # s_j[b, j, d] = sum_i c[b, j, i] * u_hat[b, j, d, i]
        # VPU broadcast-multiply + XLU lane reduce (I = 128 on lanes).
        s = jnp.sum(c[:, :, None, :] * u_hat, axis=-1)          # (TB, J, D_out)

        # squash: sq/(1+sq) * s/sqrt(sq+eps); stays on the EUP slot.
        sq = jnp.sum(s * s, axis=-1, keepdims=True)             # (TB, J, 1)
        scale = sq * pl.reciprocal(1.0 + sq, approx=True) * lax.rsqrt(sq + eps)
        v = s * scale                                           # (TB, J, D_out)

        if r < num_routing - 1:
            # agreement: b_ij[b, j, i] += sum_d v[b, j, d] * u_hat[b, j, d, i]
            agree = jnp.sum(v[:, :, :, None] * u_hat, axis=2)    # (TB, J, I)
            b_ij = agree if b_ij is None else b_ij + agree

    v_ref[...] = v.astype(v_ref.dtype)


def prepare_capsule_weights(W):
    """Torch parameter (1, I, J, D_out, D_in) -> kernel layout (D_in, J, D_out, I).

    The parameter is static: call this ONCE (outside the per-step forward) so
    the transpose/copy is not paid on every call.
    """
    if W.ndim == 5:
        W = W.reshape(W.shape[-4:])                 # (I, J, D_out, D_in)
    # W[i, j, d, k] -> W_t[k, j, d, i]: in_capsules I lands on the lane axis.
    return jnp.transpose(W, (3, 1, 2, 0)).astype(jnp.float32)


def _pick_batch_tile(B):
    # Each (J, D_out, I) f32 routing tensor is ~80 KiB per batch row at the
    # digit-caps shape; ~5 live at peak -> TB=32 (~13 MiB) fits the scoped
    # VMEM budget on v5e/v6e/v7x.  Keep >=2 grid steps so both v7x TCs get work.
    tb = min(B, 32)
    if B >= 2:
        tb = min(tb, (B + 1) // 2)
    return max(tb, 1)


def capsule_layer(x, W_t, num_routing=3, eps=1e-9):
    """Pallas TPU forward of CapsuleLayer.

    x:   (B, in_capsules, in_dim)
    W_t: (in_dim, out_capsules, out_dim, in_capsules) from prepare_capsule_weights
    returns v_j: (B, out_capsules, out_dim)
    """
    B, I, D_in = x.shape
    Dk, J, D_out, Ik = W_t.shape
    assert (Dk, Ik) == (D_in, I), (W_t.shape, x.shape)

    # Lane-dense re-layout of the activations (tiny per-call copy).
    x_t = jnp.transpose(x, (0, 2, 1)).astype(jnp.float32)        # (B, D_in, I)

    TB = _pick_batch_tile(B)
    grid = (pl.cdiv(B, TB),)

    kern = functools.partial(_capsule_kernel, num_routing=num_routing, eps=eps)
    # TODO(synk): on v6e/v7x, storing u_hat / softmax inputs in bf16 (with f32
    # accumulators) halves VMEM and ~doubles VPU/EUP rate; kept f32 so the same
    # kernel is also correct/fast on v5e.
    v = pl.pallas_call(
        kern,
        out_shape=jax.ShapeDtypeStruct((B, J, D_out), jnp.float32),
        grid_spec=pltpu.PrefetchScalarGridSpec(
            num_scalar_prefetch=0,
            grid=grid,
            in_specs=[pl.BlockSpec((TB, D_in, I), lambda b: (b, 0, 0)),
                      pl.BlockSpec((D_in, J, D_out, I), lambda b: (0, 0, 0, 0))],
            out_specs=pl.BlockSpec((TB, J, D_out), lambda b: (b, 0, 0)),
        ),
        compiler_params=pltpu.CompilerParams(
            dimension_semantics=("parallel",),
            vmem_limit_bytes=48 * 1024 * 1024),
    )(x_t, W_t)
    return v


def capsule_layer_ref(x, W, num_routing=3, eps=1e-9):
    """Pure-JAX reference mirroring the PyTorch CapsuleLayer.forward."""
    if W.ndim == 5:
        W = W.reshape(W.shape[-4:])                              # (I, J, Dout, Din)
    u_hat = jnp.einsum('ijdk,bik->bijd', W, x,
                       precision=lax.Precision.HIGHEST)          # (B, I, J, Dout)
    B, I, J, D_out = u_hat.shape
    b_ij = jnp.zeros((B, I, J), jnp.float32)
    v_j = None
    for r in range(num_routing):
        mx = jnp.max(b_ij, axis=2, keepdims=True)
        e = jnp.exp(b_ij - mx)
        c_ij = (e / jnp.sum(e, axis=2, keepdims=True))[..., None]
        s_j = jnp.sum(c_ij * u_hat, axis=1)                      # (B, J, Dout)
        sq = jnp.sum(s_j * s_j, axis=-1, keepdims=True)
        v_j = sq / (1.0 + sq) * (s_j / jnp.sqrt(sq + eps))
        if r < num_routing - 1:
            b_ij = b_ij + jnp.sum(u_hat * v_j[:, None, :, :], axis=-1)
    return v_j


if __name__ == "__main__":
    key = jax.random.PRNGKey(0)
    kx, kw = jax.random.split(key)

    # Shapes implied by AlexCapsNet's digit_caps: 128 input capsules of dim 8,
    # 10 output capsules of dim 16, batch 2.
    B, I, J, D_in, D_out = 2, 128, 10, 8, 16
    x = jax.random.normal(kx, (B, I, D_in), jnp.float32)
    W = jax.random.normal(kw, (1, I, J, D_out, D_in), jnp.float32) * 0.01

    W_t = prepare_capsule_weights(W)          # once; the parameter is static
    fwd = jax.jit(capsule_layer)
    v = jax.block_until_ready(fwd(x, W_t))
    assert v.shape == (B, J, D_out), v.shape
    assert bool(jnp.all(jnp.isfinite(v)))

    v_ref = capsule_layer_ref(x, W)
    assert bool(jnp.allclose(v, v_ref, rtol=5e-2, atol=1e-4)), \
        float(jnp.max(jnp.abs(v - v_ref)))
    print("KERNEL_OK")
</pallas_src>

<mosaic_0001>
module attributes {stable_mosaic.version = 11 : i64} {
  func.func @_capsule_kernel(%arg0: i32, %arg1: memref<1x8x128xf32, #tpu.memory_space<vmem>>, %arg2: memref<8x10x16x128xf32, #tpu.memory_space<vmem>>, %arg3: memref<1x10x16xf32, #tpu.memory_space<vmem>>) attributes {dimension_semantics = [#tpu.dimension_semantics<parallel>], iteration_bounds = array<i64: 2>, scalar_prefetch = 0 : i64, scratch_operands = 0 : i64, tpu.core_type = #tpu.core_type<tc>, window_params = [{transform_indices = @transform_0, window_bounds = array<i64: 1, 8, 128>}, {pipeline_mode = #tpu.pipeline_mode<synchronous>, transform_indices = @transform_1, window_bounds = array<i64: 8, 10, 16, 128>}, {transform_indices = @transform_2, window_bounds = array<i64: 1, 10, 16>}]} {
    %c0 = arith.constant 0 : index
    %c0_0 = arith.constant 0 : index
    %c0_1 = arith.constant 0 : index
    %0 = vector.load %arg1[%c0, %c0_0, %c0_1] : memref<1x8x128xf32, #tpu.memory_space<vmem>>, vector<1x8x128xf32>
    %c0_2 = arith.constant 0 : index
    %c0_3 = arith.constant 0 : index
    %c0_4 = arith.constant 0 : index
    %c0_5 = arith.constant 0 : index
    %1 = vector.load %arg2[%c0_2, %c0_3, %c0_4, %c0_5] : memref<8x10x16x128xf32, #tpu.memory_space<vmem>>, vector<1x10x16x128xf32>
    %2 = vector.shape_cast %1 : vector<1x10x16x128xf32> to vector<10x16x128xf32>
    %3 = vector.shape_cast %2 : vector<10x16x128xf32> to vector<1x10x16x128xf32>
    %4 = vector.extract_strided_slice %0 {offsets = [0, 0, 0], sizes = [1, 1, 128], strides = [1, 1, 1]} : vector<1x8x128xf32> to vector<1x1x128xf32>
    %5 = vector.shape_cast %4 : vector<1x1x128xf32> to vector<1x128xf32>
    %6 = vector.shape_cast %5 : vector<1x128xf32> to vector<1x1x1x128xf32>
    %7 = vector.broadcast %6 : vector<1x1x1x128xf32> to vector<1x10x16x128xf32>
    %8 = arith.mulf %3, %7 : vector<1x10x16x128xf32>
    %c1 = arith.constant 1 : index
    %c0_6 = arith.constant 0 : index
    %c0_7 = arith.constant 0 : index
    %c0_8 = arith.constant 0 : index
    %9 = vector.load %arg2[%c1, %c0_6, %c0_7, %c0_8] : memref<8x10x16x128xf32, #tpu.memory_space<vmem>>, vector<1x10x16x128xf32>
    %10 = vector.shape_cast %9 : vector<1x10x16x128xf32> to vector<10x16x128xf32>
    %11 = vector.shape_cast %10 : vector<10x16x128xf32> to vector<1x10x16x128xf32>
    %12 = vector.extract_strided_slice %0 {offsets = [0, 1, 0], sizes = [1, 1, 128], strides = [1, 1, 1]} : vector<1x8x128xf32> to vector<1x1x128xf32>
    %13 = vector.shape_cast %12 : vector<1x1x128xf32> to vector<1x128xf32>
    %14 = vector.shape_cast %13 : vector<1x128xf32> to vector<1x1x1x128xf32>
    %15 = vector.broadcast %14 : vector<1x1x1x128xf32> to vector<1x10x16x128xf32>
    %16 = arith.mulf %11, %15 : vector<1x10x16x128xf32>
    %17 = arith.addf %8, %16 : vector<1x10x16x128xf32>
    %c2 = arith.constant 2 : index
    %c0_9 = arith.constant 0 : index
    %c0_10 = arith.constant 0 : index
    %c0_11 = arith.constant 0 : index
    %18 = vector.load %arg2[%c2, %c0_9, %c0_10, %c0_11] : memref<8x10x16x128xf32, #tpu.memory_space<vmem>>, vector<1x10x16x128xf32>
    %19 = vector.shape_cast %18 : vector<1x10x16x128xf32> to vector<10x16x128xf32>
    %20 = vector.shape_cast %19 : vector<10x16x128xf32> to vector<1x10x16x128xf32>
    %21 = vector.extract_strided_slice %0 {offsets = [0, 2, 0], sizes = [1, 1, 128], strides = [1, 1, 1]} : vector<1x8x128xf32> to vector<1x1x128xf32>
    %22 = vector.shape_cast %21 : vector<1x1x128xf32> to vector<1x128xf32>
    %23 = vector.shape_cast %22 : vector<1x128xf32> to vector<1x1x1x128xf32>
    %24 = vector.broadcast %23 : vector<1x1x1x128xf32> to vector<1x10x16x128xf32>
    %25 = arith.mulf %20, %24 : vector<1x10x16x128xf32>
    %26 = arith.addf %17, %25 : vector<1x10x16x128xf32>
    %c3 = arith.constant 3 : index
    %c0_12 = arith.constant 0 : index
    %c0_13 = arith.constant 0 : index
    %c0_14 = arith.constant 0 : index
    %27 = vector.load %arg2[%c3, %c0_12, %c0_13, %c0_14] : memref<8x10x16x128xf32, #tpu.memory_space<vmem>>, vector<1x10x16x128xf32>
    %28 = vector.shape_cast %27 : vector<1x10x16x128xf32> to vector<10x16x128xf32>
    %29 = vector.shape_cast %28 : vector<10x16x128xf32> to vector<1x10x16x128xf32>
    %30 = vector.extract_strided_slice %0 {offsets = [0, 3, 0], sizes = [1, 1, 128], strides = [1, 1, 1]} : vector<1x8x128xf32> to vector<1x1x128xf32>
    %31 = vector.shape_cast %30 : vector<1x1x128xf32> to vector<1x128xf32>
    %32 = vector.shape_cast %31 : vector<1x128xf32> to vector<1x1x1x128xf32>
    %33 = vector.broadcast %32 : vector<1x1x1x128xf32> to vector<1x10x16x128xf32>
    %34 = arith.mulf %29, %33 : vector<1x10x16x128xf32>
    %35 = arith.addf %26, %34 : vector<1x10x16x128xf32>
    %c4 = arith.constant 4 : index
    %c0_15 = arith.constant 0 : index
    %c0_16 = arith.constant 0 : index
    %c0_17 = arith.constant 0 : index
    %36 = vector.load %arg2[%c4, %c0_15, %c0_16, %c0_17] : memref<8x10x16x128xf32, #tpu.memory_space<vmem>>, vector<1x10x16x128xf32>
    %37 = vector.shape_cast %36 : vector<1x10x16x128xf32> to vector<10x16x128xf32>
    %38 = vector.shape_cast %37 : vector<10x16x128xf32> to vector<1x10x16x128xf32>
    %39 = vector.extract_strided_slice %0 {offsets = [0, 4, 0], sizes = [1, 1, 128], strides = [1, 1, 1]} : vector<1x8x128xf32> to vector<1x1x128xf32>
    %40 = vector.shape_cast %39 : vector<1x1x128xf32> to vector<1x128xf32>
    %41 = vector.shape_cast %40 : vector<1x128xf32> to vector<1x1x1x128xf32>
    %42 = vector.broadcast %41 : vector<1x1x1x128xf32> to vector<1x10x16x128xf32>
    %43 = arith.mulf %38, %42 : vector<1x10x16x128xf32>
    %44 = arith.addf %35, %43 : vector<1x10x16x128xf32>
    %c5 = arith.constant 5 : index
    %c0_18 = arith.constant 0 : index
    %c0_19 = arith.constant 0 : index
    %c0_20 = arith.constant 0 : index
    %45 = vector.load %arg2[%c5, %c0_18, %c0_19, %c0_20] : memref<8x10x16x128xf32, #tpu.memory_space<vmem>>, vector<1x10x16x128xf32>
    %46 = vector.shape_cast %45 : vector<1x10x16x128xf32> to vector<10x16x128xf32>
    %47 = vector.shape_cast %46 : vector<10x16x128xf32> to vector<1x10x16x128xf32>
    %48 = vector.extract_strided_slice %0 {offsets = [0, 5, 0], sizes = [1, 1, 128], strides = [1, 1, 1]} : vector<1x8x128xf32> to vector<1x1x128xf32>
    %49 = vector.shape_cast %48 : vector<1x1x128xf32> to vector<1x128xf32>
    %50 = vector.shape_cast %49 : vector<1x128xf32> to vector<1x1x1x128xf32>
    %51 = vector.broadcast %50 : vector<1x1x1x128xf32> to vector<1x10x16x128xf32>
    %52 = arith.mulf %47, %51 : vector<1x10x16x128xf32>
    %53 = arith.addf %44, %52 : vector<1x10x16x128xf32>
    %c6 = arith.constant 6 : index
    %c0_21 = arith.constant 0 : index
    %c0_22 = arith.constant 0 : index
    %c0_23 = arith.constant 0 : index
    %54 = vector.load %arg2[%c6, %c0_21, %c0_22, %c0_23] : memref<8x10x16x128xf32, #tpu.memory_space<vmem>>, vector<1x10x16x128xf32>
    %55 = vector.shape_cast %54 : vector<1x10x16x128xf32> to vector<10x16x128xf32>
    %56 = vector.shape_cast %55 : vector<10x16x128xf32> to vector<1x10x16x128xf32>
    %57 = vector.extract_strided_slice %0 {offsets = [0, 6, 0], sizes = [1, 1, 128], strides = [1, 1, 1]} : vector<1x8x128xf32> to vector<1x1x128xf32>
    %58 = vector.shape_cast %57 : vector<1x1x128xf32> to vector<1x128xf32>
    %59 = vector.shape_cast %58 : vector<1x128xf32> to vector<1x1x1x128xf32>
    %60 = vector.broadcast %59 : vector<1x1x1x128xf32> to vector<1x10x16x128xf32>
    %61 = arith.mulf %56, %60 : vector<1x10x16x128xf32>
    %62 = arith.addf %53, %61 : vector<1x10x16x128xf32>
    %c7 = arith.constant 7 : index
    %c0_24 = arith.constant 0 : index
    %c0_25 = arith.constant 0 : index
    %c0_26 = arith.constant 0 : index
    %63 = vector.load %arg2[%c7, %c0_24, %c0_25, %c0_26] : memref<8x10x16x128xf32, #tpu.memory_space<vmem>>, vector<1x10x16x128xf32>
    %64 = vector.shape_cast %63 : vector<1x10x16x128xf32> to vector<10x16x128xf32>
    %65 = vector.shape_cast %64 : vector<10x16x128xf32> to vector<1x10x16x128xf32>
    %66 = vector.extract_strided_slice %0 {offsets = [0, 7, 0], sizes = [1, 1, 128], strides = [1, 1, 1]} : vector<1x8x128xf32> to vector<1x1x128xf32>
    %67 = vector.shape_cast %66 : vector<1x1x128xf32> to vector<1x128xf32>
    %68 = vector.shape_cast %67 : vector<1x128xf32> to vector<1x1x1x128xf32>
    %69 = vector.broadcast %68 : vector<1x1x1x128xf32> to vector<1x10x16x128xf32>
    %70 = arith.mulf %65, %69 : vector<1x10x16x128xf32>
    %71 = arith.addf %62, %70 : vector<1x10x16x128xf32>
    %cst = arith.constant 1.000000e-01 : f32
    %72 = vector.broadcast %cst : f32 to vector<1x10x128xf32>
    %73 = vector.shape_cast %72 : vector<1x10x128xf32> to vector<1x10x1x128xf32>
    %74 = vector.broadcast %73 : vector<1x10x1x128xf32> to vector<1x10x16x128xf32>
    %75 = arith.mulf %74, %71 : vector<1x10x16x128xf32>
    %cst_27 = arith.constant dense<0.000000e+00> : vector<1x10x16xf32>
    %76 = vector.multi_reduction <add>, %75, %cst_27 [3] : vector<1x10x16x128xf32> to vector<1x10x16xf32>
    %77 = arith.mulf %76, %76 : vector<1x10x16xf32>
    %cst_28 = arith.constant dense<0.000000e+00> : vector<1x10xf32>
    %78 = vector.multi_reduction <add>, %77, %cst_28 [2] : vector<1x10x16xf32> to vector<1x10xf32>
    %79 = vector.shape_cast %78 : vector<1x10xf32> to vector<1x10x1xf32>
    %cst_29 = arith.constant 1.000000e+00 : f32
    %80 = vector.broadcast %cst_29 : f32 to vector<1x10x1xf32>
    %81 = arith.addf %80, %79 : vector<1x10x1xf32>
    %82 = tpu.reciprocal %81 {approx = true} : vector<1x10x1xf32> -> vector<1x10x1xf32>
    %83 = arith.mulf %79, %82 : vector<1x10x1xf32>
    %cst_30 = arith.constant 9.99999971E-10 : f32
    %84 = vector.broadcast %cst_30 : f32 to vector<1x10x1xf32>
    %85 = arith.addf %79, %84 : vector<1x10x1xf32>
    %86 = math.rsqrt %85 : vector<1x10x1xf32>
    %87 = arith.mulf %83, %86 : vector<1x10x1xf32>
    %88 = vector.broadcast %87 : vector<1x10x1xf32> to vector<1x10x16xf32>
    %89 = arith.mulf %76, %88 : vector<1x10x16xf32>
    %90 = vector.shape_cast %89 : vector<1x10x16xf32> to vector<1x10x16x1xf32>
    %91 = vector.broadcast %90 : vector<1x10x16x1xf32> to vector<1x10x16x128xf32>
    %92 = arith.mulf %91, %71 : vector<1x10x16x128xf32>
    %cst_31 = arith.constant dense<0.000000e+00> : vector<1x10x128xf32>
    %93 = vector.multi_reduction <add>, %92, %cst_31 [2] : vector<1x10x16x128xf32> to vector<1x10x128xf32>
    %cst_32 = arith.constant dense<0xFF800000> : vector<1x128xf32>
    %94 = vector.multi_reduction <maximumf>, %93, %cst_32 [1] : vector<1x10x128xf32> to vector<1x128xf32>
    %95 = vector.shape_cast %94 : vector<1x128xf32> to vector<1x1x128xf32>
    %96 = vector.broadcast %95 : vector<1x1x128xf32> to vector<1x10x128xf32>
    %97 = arith.subf %93, %96 : vector<1x10x128xf32>
    %98 = math.exp %97 : vector<1x10x128xf32>
    %cst_33 = arith.constant dense<0.000000e+00> : vector<1x128xf32>
    %99 = vector.multi_reduction <add>, %98, %cst_33 [1] : vector<1x10x128xf32> to vector<1x128xf32>
    %100 = vector.shape_cast %99 : vector<1x128xf32> to vector<1x1x128xf32>
    %101 = tpu.reciprocal %100 {approx = true} : vector<1x1x128xf32> -> vector<1x1x128xf32>
    %102 = vector.broadcast %101 : vector<1x1x128xf32> to vector<1x10x128xf32>
    %103 = arith.mulf %98, %102 : vector<1x10x128xf32>
    %104 = vector.shape_cast %103 : vector<1x10x128xf32> to vector<1x10x1x128xf32>
    %105 = vector.broadcast %104 : vector<1x10x1x128xf32> to vector<1x10x16x128xf32>
    %106 = arith.mulf %105, %71 : vector<1x10x16x128xf32>
    %cst_34 = arith.constant dense<0.000000e+00> : vector<1x10x16xf32>
    %107 = vector.multi_reduction <add>, %106, %cst_34 [3] : vector<1x10x16x128xf32> to vector<1x10x16xf32>
    %108 = arith.mulf %107, %107 : vector<1x10x16xf32>
    %cst_35 = arith.constant dense<0.000000e+00> : vector<1x10xf32>
    %109 = vector.multi_reduction <add>, %108, %cst_35 [2] : vector<1x10x16xf32> to vector<1x10xf32>
    %110 = vector.shape_cast %109 : vector<1x10xf32> to vector<1x10x1xf32>
    %cst_36 = arith.constant 1.000000e+00 : f32
    %111 = vector.broadcast %cst_36 : f32 to vector<1x10x1xf32>
    %112 = arith.addf %111, %110 : vector<1x10x1xf32>
    %113 = tpu.reciprocal %112 {approx = true} : vector<1x10x1xf32> -> vector<1x10x1xf32>
    %114 = arith.mulf %110, %113 : vector<1x10x1xf32>
    %cst_37 = arith.constant 9.99999971E-10 : f32
    %115 = vector.broadcast %cst_37 : f32 to vector<1x10x1xf32>
    %116 = arith.addf %110, %115 : vector<1x10x1xf32>
    %117 = math.rsqrt %116 : vector<1x10x1xf32>
    %118 = arith.mulf %114, %117 : vector<1x10x1xf32>
    %119 = vector.broadcast %118 : vector<1x10x1xf32> to vector<1x10x16xf32>
    %120 = arith.mulf %107, %119 : vector<1x10x16xf32>
    %121 = vector.shape_cast %120 : vector<1x10x16xf32> to vector<1x10x16x1xf32>
    %122 = vector.broadcast %121 : vector<1x10x16x1xf32> to vector<1x10x16x128xf32>
    %123 = arith.mulf %122, %71 : vector<1x10x16x128xf32>
    %cst_38 = arith.constant dense<0.000000e+00> : vector<1x10x128xf32>
    %124 = vector.multi_reduction <add>, %123, %cst_38 [2] : vector<1x10x16x128xf32> to vector<1x10x128xf32>
    %125 = arith.addf %93, %124 : vector<1x10x128xf32>
    %cst_39 = arith.constant dense<0xFF800000> : vector<1x128xf32>
    %126 = vector.multi_reduction <maximumf>, %125, %cst_39 [1] : vector<1x10x128xf32> to vector<1x128xf32>
    %127 = vector.shape_cast %126 : vector<1x128xf32> to vector<1x1x128xf32>
    %128 = vector.broadcast %127 : vector<1x1x128xf32> to vector<1x10x128xf32>
    %129 = arith.subf %125, %128 : vector<1x10x128xf32>
    %130 = math.exp %129 : vector<1x10x128xf32>
    %cst_40 = arith.constant dense<0.000000e+00> : vector<1x128xf32>
    %131 = vector.multi_reduction <add>, %130, %cst_40 [1] : vector<1x10x128xf32> to vector<1x128xf32>
    %132 = vector.shape_cast %131 : vector<1x128xf32> to vector<1x1x128xf32>
    %133 = tpu.reciprocal %132 {approx = true} : vector<1x1x128xf32> -> vector<1x1x128xf32>
    %134 = vector.broadcast %133 : vector<1x1x128xf32> to vector<1x10x128xf32>
    %135 = arith.mulf %130, %134 : vector<1x10x128xf32>
    %136 = vector.shape_cast %135 : vector<1x10x128xf32> to vector<1x10x1x128xf32>
    %137 = vector.broadcast %136 : vector<1x10x1x128xf32> to vector<1x10x16x128xf32>
    %138 = arith.mulf %137, %71 : vector<1x10x16x128xf32>
    %cst_41 = arith.constant dense<0.000000e+00> : vector<1x10x16xf32>
    %139 = vector.multi_reduction <add>, %138, %cst_41 [3] : vector<1x10x16x128xf32> to vector<1x10x16xf32>
    %140 = arith.mulf %139, %139 : vector<1x10x16xf32>
    %cst_42 = arith.constant dense<0.000000e+00> : vector<1x10xf32>
    %141 = vector.multi_reduction <add>, %140, %cst_42 [2] : vector<1x10x16xf32> to vector<1x10xf32>
    %142 = vector.shape_cast %141 : vector<1x10xf32> to vector<1x10x1xf32>
    %cst_43 = arith.constant 1.000000e+00 : f32
    %143 = vector.broadcast %cst_43 : f32 to vector<1x10x1xf32>
    %144 = arith.addf %143, %142 : vector<1x10x1xf32>
    %145 = tpu.reciprocal %144 {approx = true} : vector<1x10x1xf32> -> vector<1x10x1xf32>
    %146 = arith.mulf %142, %145 : vector<1x10x1xf32>
    %cst_44 = arith.constant 9.99999971E-10 : f32
    %147 = vector.broadcast %cst_44 : f32 to vector<1x10x1xf32>
    %148 = arith.addf %142, %147 : vector<1x10x1xf32>
    %149 = math.rsqrt %148 : vector<1x10x1xf32>
    %150 = arith.mulf %146, %149 : vector<1x10x1xf32>
    %151 = vector.broadcast %150 : vector<1x10x1xf32> to vector<1x10x16xf32>
    %152 = arith.mulf %139, %151 : vector<1x10x16xf32>
    %c0_45 = arith.constant 0 : index
    %c0_46 = arith.constant 0 : index
    %c0_47 = arith.constant 0 : index
    %153 = vector.load %arg3[%c0_45, %c0_46, %c0_47] : memref<1x10x16xf32, #tpu.memory_space<vmem>>, vector<1x10x16xf32>
    tpu.vector_store %arg3[%c0_45, %c0_46, %c0_47], %152 {strides = array<i32>} : memref<1x10x16xf32, #tpu.memory_space<vmem>>, vector<1x10x16xf32>,
    return
  }
  func.func @transform_0(%arg0: i32) -> (i32, i32, i32) {
    %c0_i32 = arith.constant 0 : i32
    %c0_i32_0 = arith.constant 0 : i32
    %c0_i32_1 = arith.constant 0 : i32
    return %arg0, %c0_i32, %c0_i32_0 : i32, i32, i32
  }
  func.func @transform_1(%arg0: i32) -> (i32, i32, i32, i32) {
    %c0_i32 = arith.constant 0 : i32
    %c0_i32_0 = arith.constant 0 : i32
    %c0_i32_1 = arith.constant 0 : i32
    %c0_i32_2 = arith.constant 0 : i32
    %c0_i32_3 = arith.constant 0 : i32
    return %c0_i32, %c0_i32_0, %c0_i32_1, %c0_i32_2 : i32, i32, i32, i32
  }
  func.func @transform_2(%arg0: i32) -> (i32, i32, i32) {
    %c0_i32 = arith.constant 0 : i32
    %c0_i32_0 = arith.constant 0 : i32
    %c0_i32_1 = arith.constant 0 : i32
    return %arg0, %c0_i32, %c0_i32_0 : i32, i32, i32
  }
}

</mosaic_0001>

<bundles_post_ra>
// kernel: capsule_layer.1
= control target key start
LH: loop header
LB: loop body
LE: loop exit
PB: predicated region body
PF: predicated region fallthrough
CT: control target
= control target key end

     0   :  { %7 = vsyncpa [#allocation3], 0  ;;  %s3343_s0 = inlined_call_operand.hbm [shape: f32[2,8,128], index: 0, kind: input, shape index: {}]   ;;  %s3344_s1 = inlined_call_operand.hbm [shape: f32[8,10,16,128], index: 1, kind: input, shape index: {}]   ;;  %s3345_s2 = inlined_call_operand.vmem [shape: f32[2,10,16], index: 2, kind: output, shape index: {}]  }
   0x1   :  { %9 = vsyncpa [#allocation3 + $0x1], 0 }
   0x2   :  { %10 = vsyncpa [#allocation5], 0  ;;  %s2364_s9 = smov 0   ;;  %s2366_s10 = smov 0  }
   0x3   :  { %s2368_s11 = smov 0   ;;  %s2370_s12 = smov 0  }
   0x4 LB: > { %s105_s15 = sshll.u32 %s3344_s1, 4  ;;  %s2386_s16 = sadd.s32 4294967295, %s2343_s12   ;;  %s2343_s12 = sphi %s2370_s12, %s3390_s12   ;;  %s2339_s11 = sphi %s2368_s11, %s3389_s11   ;;  %s2335_s10 = sphi %s2366_s10, %s3388_s10   ;;  %s2331_s9 = sphi %s2364_s9, %s3387_s9   ;;  %s106_s15 = int_to_ptr.hbm [resolvable:$true] %s105_s15 }
   0x5   : > { %p2108_p0 = scmp.ge.s32.totalorder %s2343_s12, 1  ;;  %p37_p1 = scmp.eq.s32.totalorder %s2386_s16, 0 }
   0x6   : > { %p94_p2 = scmp.lt.s32.totalorder %s2343_s12, 3  ;;  %s2345_s18 = smov [#allocation4]  }
   0x7   : > { %s107_s19 = sshll.u32 %s2345_s18, 4  ;;  %s2346_s20 = smov 128   ;;  %s108_s19 = int_to_ptr.vmem [resolvable:$true] %s107_s19 }
   0x8   : > { %p2391_p3 = pnand %p2108_p0, %p94_p2  ;;  %s2347_s21 = smov 8  }
   0x9   : > { %s2400_s22 = sadd.s32 1, %s2343_s12   ;;  %s23_s24 = sadd.s32 1, %s2339_s11 }
   0xa   : > { %p2127_p4 = pneg %p2391_p3  ;;  %s20_s23 = ssub.s32 %s2343_s12, %s2400_s22 }
   0xb   : > { %p21_p6 = scmp.eq.s32.totalorder %s20_s23, 0  ;;  %p30_p7 = scmp.ne.s32.totalorder %s2339_s11, %s2335_s10 }
   0xc   : > { %p2128_p5 = pnand %p2127_p4, %p37_p1  ;;  %p31_p8 = scmp.eq.s32.totalorder %s2343_s12, 0 }
   0xd   : > { %p36_p9 = scmp.ne.s32.totalorder %s2335_s10, %s2331_s9  ;;  %p2136_p12 = scmp.lt.s32.totalorder %s2343_s12, 2 }
   0xe   : > { %2130 = dma.hbm_to_vmem [thread:$0]  (!%p2128_p5), %s106_s15, 20480, %s108_s19, [#allocation5], %s2346_s20, %s2346_s20, %s2347_s21  }
   0xf   : > { %s2410_s25 = scalar_select %p21_p6, %s2339_s11, %s23_s24  }
  0x10   : > { %p32_p10 = por %p31_p8, %p30_p7  ;;  %p2414_p11 = por %p37_p1, %p36_p9 }
  0x11   : > { %s121_s27 = sand.u32 1, %s2339_s11   ;;  %s2112_s29 = sshll.u32 %s2343_s12, 3 }
  0x12   : > { %s2111_s28 = sshll.u32 %s121_s27, 3  ;;  %s129_s4 = scalar_lea.hbm %s3343_s0, %s2112_s29 }
  0x13   : > { %s125_s5 = scalar_lea.vmem [#allocation2], %s2111_s28  ;;  %s131_s7 = sshll.u32 %s129_s4, 4  ;;  %s132_s7 = int_to_ptr.hbm [resolvable:$true] %s131_s7 }
  0x14   : > { %s133_s6 = sshll.u32 %s125_s5, 4  ;;  %p2424_p13 = pnand %p2136_p12, %p32_p10  ;;  %s134_s6 = int_to_ptr.vmem [resolvable:$true] %s133_s6 }
  0x15   : > { %s122_s9 = scalar_lea.sflag [#allocation3], %s121_s27  ;;  %s2275_s13 = sshra.s32 %s132_s7, 4  ;;  %s2276_s13 = int_to_ptr.hbm [resolvable:$true] %s2275_s13 }
  0x16   : > { %s2277_s14 = scalar_lea.hbm %s2276_s13, 8  ;;  %p2279_p2 = pneg %p2424_p13 }
  0x17   : > { %p2278_p0 = scmp.ne.s32.totalorder %s2276_s13, %s2277_s14  ;;  %s2282_s18 = scalar_lea.hbm %s3343_s0, 16 }
  0x18   : > { %p2283_p6 = scmp.lt.s32.totalorder %s2276_s13, %s3343_s0  ;;  %p2284_p7 = scmp.lt.s32.totalorder %s2282_s18, %s2277_s14 }
  0x19   : > { %p2280_p4 = pnand %p2279_p2, %p2278_p0 }
  0x1a   : > { %p2285_p8 = por %p2284_p7, %p2283_p6 }
  0x1b   : > { %p2281_p5 = pneg %p2280_p4 }
  0x1d   : > { %p2286_p9 = pnand %p2285_p8, %p2281_p5 }
  0x1f   : > { %2289 = shalt.err (!%p2286_p9)
}
  0x20   : > { %2134 = dma.hbm_to_vmem [thread:$0]  (!%p2424_p13), %s132_s7, 128, %s134_s6, %s122_s9  }
  0x21   : > { %142 = sbr.rel (%p2391_p3) target bundleno = 1646 (0x66e), region = 28 }
  0x26   : > { %s144_s21 = sand.u32 1, %s2335_s10  }
  0x27   : > { %s2114_s23 = sshll.u32 %s144_s21, 3  ;;  %s145_s24 = scalar_lea.sflag [#allocation3], %s144_s21 }
  0x28   : > { %s148_s27 = scalar_lea.vmem [#allocation2], %s2114_s23 }
  0x29   : > { %2322 = dma.done.wait (%p2414_p11), %s145_s24, 128  }
  0x2a   : > { %2324 = vsyncadd (%p2414_p11), %s145_s24, 4294967168 }
  0x2b   : > { %2326 = dma.done.wait (%p37_p1), [#allocation5], 20480  }
  0x2c   : > { %2328 = vsyncadd (%p37_p1), [#allocation5], 4294946816  ;;  %v180_v0 = vld [vmem:[%s148_s27] sm:$0xff]  ;;  %v185_v1 = vld [vmem:[#allocation4 + $0x20] sm:$0xff]  ;;  %vm761_vm0 = vcmask 130112   ;;  %vm790_vm1 = vcmask 1041409  }
  0x2d   : > { %v227_v2 = vld [vmem:[#allocation4 + $0xc0] sm:$0xff]  ;;  %v2449_v3 = vperm.slane %v180_v0, 0  ;;  %v2451_v4 = vperm.slane %v180_v0, 1  ;;  %v2453_v6 = vperm.slane %v180_v0, 2  ;;  %v2455_v8 = vperm.slane %v180_v0, 3  ;;  %v183_v19 = vld [vmem:[#allocation4 + $0x10] sm:$0xff] }
  0x2e   : > { %v289_v5 = vld [vmem:[#allocation4 + $0x160] sm:$0xff]  ;;  %v2457_v10 = vperm.slane %v180_v0, 4  ;;  %v2459_v12 = vperm.slane %v180_v0, 5  ;;  %v2461_v14 = vperm.slane %v180_v0, 6  ;;  %v225_v20 = vld [vmem:[#allocation4 + $0xb0] sm:$0xff]  ;;  %v2467_v22 = vperm.slane %v180_v0, 7 }
  0x2f   : > { %v351_v7 = vld [vmem:[#allocation4 + $0x200] sm:$0xff]  ;;  %v206_v15 = vmul.f32 %v2449_v3, %v185_v1  ;;  %v248_v16 = vmul.f32 %v2451_v4, %v227_v2  ;;  %v310_v17 = vmul.f32 %v2453_v6, %v289_v5  ;;  %v287_v23 = vld [vmem:[#allocation4 + $0x150] sm:$0xff]  ;;  %v204_v27 = vmul.f32 %v2449_v3, %v183_v19  ;;  %v186_v52 = vld [vmem:[#allocation4 + $0x28] sm:$0xff]  ;;  %p175_p1 = scmp.lt.s32.totalorder %s2386_s16, 1 }
  0x30   : > { %v413_v9 = vld [vmem:[#allocation4 + $0x2a0] sm:$0xff]  ;;  %v372_v21 = vmul.f32 %v2455_v8, %v351_v7  ;;  %v349_v24 = vld [vmem:[#allocation4 + $0x1f0] sm:$0xff]  ;;  %v246_v28 = vmul.f32 %v2451_v4, %v225_v20  ;;  %v308_v29 = vmul.f32 %v2453_v6, %v287_v23  ;;  %v228_v58 = vld [vmem:[#allocation4 + $0xc8] sm:$0xff]  ;;  %v207_v63 = vmul.f32 %v2449_v3, %v186_v52 }
  0x31   : > { %v475_v11 = vld [vmem:[#allocation4 + $0x340] sm:$0xff]  ;;  %v411_v25 = vld [vmem:[#allocation4 + $0x290] sm:$0xff]  ;;  %v268_v26 = vadd.f32 %v248_v16, %v206_v15  ;;  %v434_v33 = vmul.f32 %v2457_v10, %v413_v9  ;;  %v370_v42 = vmul.f32 %v2455_v8, %v349_v24  ;;  %v290_v59 = vld [vmem:[#allocation4 + $0x168] sm:$0xff]  ;;  %v249_v5 = vmul.f32 %v2451_v4, %v228_v58  ;;  %s3392_s16 = smov (!%p175_p1, %s2386_s16), 1 }
  0x32   : > { %v537_v13 = vld [vmem:[#allocation4 + $0x3e0] sm:$0xff]  ;;  %v473_v30 = vld [vmem:[#allocation4 + $0x330] sm:$0xff]  ;;  %v496_v34 = vmul.f32 %v2459_v12, %v475_v11  ;;  %v266_v41 = vadd.f32 %v246_v28, %v204_v27  ;;  %v432_v43 = vmul.f32 %v2457_v10, %v411_v25  ;;  %v352_v0 = vld [vmem:[#allocation4 + $0x208] sm:$0xff]  ;;  %v311_v7 = vmul.f32 %v2453_v6, %v290_v59  ;;  %s2120_s17 = sshll.u32 %s3392_s16, 4 }
  0x33   : > { %v599_v18 = vld [vmem:[#allocation4 + $0x480] sm:$0xff]  ;;  %v535_v31 = vld [vmem:[#allocation4 + $0x3d0] sm:$0xff]  ;;  %v558_v35 = vmul.f32 %v2461_v14, %v537_v13  ;;  %v330_v40 = vadd.f32 %v310_v17, %v268_v26  ;;  %v494_v46 = vmul.f32 %v2459_v12, %v473_v30  ;;  %v414_v9 = vld [vmem:[#allocation4 + $0x2a8] sm:$0xff]  ;;  %v269_v23 = vadd.f32 %v249_v5, %v207_v63  ;;  %s179_s29 = scalar_lea.vmem %s3345_s2, %s2120_s17 }
  0x34   : > { %v597_v32 = vld [vmem:[#allocation4 + $0x470] sm:$0xff]  ;;  %v2476_v36 = vmul.f32 %v2467_v22, %v599_v18  ;;  %v181_v37 = vld [vmem:[#allocation4] sm:$0xff]  ;;  %v328_v54 = vadd.f32 %v308_v29, %v266_v41  ;;  %v556_v55 = vmul.f32 %v2461_v14, %v535_v31  ;;  %v184_v11 = vld [vmem:[#allocation4 + $0x18] sm:$0xff]  ;;  %v373_v24 = vmul.f32 %v2455_v8, %v352_v0 }
  0x35   : > { %v223_v38 = vld [vmem:[#allocation4 + $0xa0] sm:$0xff]  ;;  %v202_v47 = vmul.f32 %v2449_v3, %v181_v37  ;;  %v392_v53 = vadd.f32 %v372_v21, %v330_v40  ;;  %v618_v56 = vmul.f32 %v2467_v22, %v597_v32  ;;  %v226_v13 = vld [vmem:[#allocation4 + $0xb8] sm:$0xff]  ;;  %v476_v25 = vld [vmem:[#allocation4 + $0x348] sm:$0xff]  ;;  %v435_v28 = vmul.f32 %v2457_v10, %v414_v9 }
  0x36   : > { %v285_v39 = vld [vmem:[#allocation4 + $0x140] sm:$0xff]  ;;  %v244_v48 = vmul.f32 %v2451_v4, %v223_v38  ;;  %v390_v2 = vadd.f32 %v370_v42, %v328_v54  ;;  %v288_v19 = vld [vmem:[#allocation4 + $0x158] sm:$0xff]  ;;  %v538_v29 = vld [vmem:[#allocation4 + $0x3e8] sm:$0xff]  ;;  %v205_v30 = vmul.f32 %v2449_v3, %v184_v11  ;;  %v247_v31 = vmul.f32 %v2451_v4, %v226_v13 }
  0x37   : > { %v347_v44 = vld [vmem:[#allocation4 + $0x1e0] sm:$0xff]  ;;  %v306_v49 = vmul.f32 %v2453_v6, %v285_v39  ;;  %v454_v1 = vadd.f32 %v434_v33, %v392_v53  ;;  %v350_v26 = vld [vmem:[#allocation4 + $0x1f8] sm:$0xff]  ;;  %v331_v37 = vadd.f32 %v311_v7, %v269_v23  ;;  %v309_v38 = vmul.f32 %v2453_v6, %v288_v19 }
  0x38   : > { %v409_v45 = vld [vmem:[#allocation4 + $0x280] sm:$0xff]  ;;  %v264_v60 = vadd.f32 %v244_v48, %v202_v47  ;;  %v368_v61 = vmul.f32 %v2455_v8, %v347_v44  ;;  %v452_v21 = vadd.f32 %v432_v43, %v390_v2  ;;  %v474_v39 = vld [vmem:[#allocation4 + $0x338] sm:$0xff]  ;;  %v497_v41 = vmul.f32 %v2459_v12, %v476_v25  ;;  %v182_v44 = vld [vmem:[#allocation4 + $0x8] sm:$0xff] }
  0x39   : > { %v471_v50 = vld [vmem:[#allocation4 + $0x320] sm:$0xff]  ;;  %v430_v62 = vmul.f32 %v2457_v10, %v409_v45  ;;  %v516_v20 = vadd.f32 %v496_v34, %v454_v1  ;;  %v412_v34 = vld [vmem:[#allocation4 + $0x298] sm:$0xff]  ;;  %v267_v42 = vadd.f32 %v247_v31, %v205_v30  ;;  %v371_v43 = vmul.f32 %v2455_v8, %v350_v26  ;;  %v410_v2 = vld [vmem:[#allocation4 + $0x288] sm:$0xff] }
  0x3a   : > { %v533_v51 = vld [vmem:[#allocation4 + $0x3c0] sm:$0xff]  ;;  %v326_v15 = vadd.f32 %v306_v49, %v264_v60  ;;  %v492_v16 = vmul.f32 %v2459_v12, %v471_v50  ;;  %v514_v33 = vadd.f32 %v494_v46, %v452_v21  ;;  %v393_v48 = vadd.f32 %v373_v24, %v331_v37  ;;  %v224_v46 = vld [vmem:[#allocation4 + $0xa8] sm:$0xff]  ;;  %v598_v63 = vld [vmem:[#allocation4 + $0x478] sm:$0xff] }
  0x3b   : > { %v595_v57 = vld [vmem:[#allocation4 + $0x460] sm:$0xff]  ;;  %v554_v17 = vmul.f32 %v2461_v14, %v533_v51  ;;  %v578_v32 = vadd.f32 %v558_v35, %v516_v20  ;;  %v559_v35 = vmul.f32 %v2461_v14, %v538_v29  ;;  %v286_v49 = vld [vmem:[#allocation4 + $0x148] sm:$0xff]  ;;  %v329_v52 = vadd.f32 %v309_v38, %v267_v42  ;;  %v188_v5 = vld [vmem:[#allocation4 + $0x38] sm:$0xff] }
  0x3c   : > { %v616_v18 = vmul.f32 %v2467_v22, %v595_v57  ;;  %v388_v27 = vadd.f32 %v368_v61, %v326_v15  ;;  %v576_v47 = vadd.f32 %v556_v55, %v514_v33  ;;  %v600_v51 = vld [vmem:[#allocation4 + $0x488] sm:$0xff]  ;;  %v433_v53 = vmul.f32 %v2457_v10, %v412_v34  ;;  %v536_v57 = vld [vmem:[#allocation4 + $0x3d8] sm:$0xff]  ;;  %v187_v33 = vld [vmem:[#allocation4 + $0x30] sm:$0xff] }
  0x3d   : > { %v2502_v45 = vadd.f32 %v2476_v36, %v578_v32  ;;  %v495_v54 = vmul.f32 %v2459_v12, %v474_v39  ;;  %v455_v36 = vadd.f32 %v435_v28, %v393_v48  ;;  %v203_v55 = vmul.f32 %v2449_v3, %v182_v44  ;;  %v348_v60 = vld [vmem:[#allocation4 + $0x1e8] sm:$0xff]  ;;  %v230_v13 = vld [vmem:[#allocation4 + $0xd8] sm:$0xff]  ;;  %v291_v48 = vld [vmem:[#allocation4 + $0x170] sm:$0xff] }
  0x3e   : > { %v450_v40 = vadd.f32 %v430_v62, %v388_v27  ;;  %v2508_v59 = vadd.f32 %v618_v56, %v576_v47  ;;  %v391_v62 = vadd.f32 %v371_v43, %v329_v52  ;;  %v245_v0 = vmul.f32 %v2451_v4, %v224_v46  ;;  %v472_v20 = vld [vmem:[#allocation4 + $0x328] sm:$0xff]  ;;  %v292_v21 = vld [vmem:[#allocation4 + $0x178] sm:$0xff] }
  0x3f   : > { %v660_v58 = vmul.f32 0.1, %v2502_v45  ;;  %v307_v1 = vmul.f32 %v2453_v6, %v286_v49  ;;  %v517_v9 = vadd.f32 %v497_v41, %v455_v36  ;;  %v621_v56 = vmul.f32 %v2467_v22, %v600_v51  ;;  %v354_v27 = vld [vmem:[#allocation4 + $0x218] sm:$0xff]  ;;  %v534_v30 = vld [vmem:[#allocation4 + $0x3c8] sm:$0xff]  ;;  %v415_v36 = vld [vmem:[#allocation4 + $0x2b0] sm:$0xff] }
  0x40   : > { %v512_v50 = vadd.f32 %v492_v16, %v450_v40  ;;  %v658_v7 = vmul.f32 0.1, %v2508_v59  ;;  %v557_v11 = vmul.f32 %v2461_v14, %v536_v57  ;;  %v453_v16 = vadd.f32 %v433_v53, %v391_v62  ;;  %v416_v32 = vld [vmem:[#allocation4 + $0x2b8] sm:$0xff]  ;;  %v596_v34 = vld [vmem:[#allocation4 + $0x468] sm:$0xff]  ;;  %v229_v40 = vld [vmem:[#allocation4 + $0xd0] sm:$0xff] }
  0x41   : > { %684 = vadd.xlane.f32.xlu2 %v660_v58  ;;  %v369_v19 = vmul.f32 %v2455_v8, %v348_v60  ;;  %v579_v23 = vadd.f32 %v559_v35, %v517_v9  ;;  %v619_v24 = vmul.f32 %v2467_v22, %v598_v63  ;;  %v431_v25 = vmul.f32 %v2457_v10, %v410_v2  ;;  %v478_v47 = vld [vmem:[#allocation4 + $0x358] sm:$0xff]  ;;  %v353_v35 = vld [vmem:[#allocation4 + $0x210] sm:$0xff]  ;;  %v231_v60 = vld [vmem:[#allocation4 + $0xe0] sm:$0xff] }
  0x42   : > { %v574_v61 = vadd.f32 %v554_v17, %v512_v50  ;;  %v265_v17 = vadd.f32 %v245_v0, %v203_v55  ;;  %680 = vadd.xlane.f32.xlu1 %v658_v7  ;;  %v209_v26 = vmul.f32 %v2449_v3, %v188_v5  ;;  %v515_v29 = vadd.f32 %v495_v54, %v453_v16  ;;  %v540_v51 = vld [vmem:[#allocation4 + $0x3f8] sm:$0xff]  ;;  %v189_v55 = vld [vmem:[#allocation4 + $0x40] sm:$0xff] }
  0x43   : > { %v251_v31 = vmul.f32 %v2451_v4, %v230_v13  ;;  %v2524_v37 = vadd.f32 %v621_v56, %v579_v23  ;;  %v493_v38 = vmul.f32 %v2459_v12, %v472_v20  ;;  %v313_v39 = vmul.f32 %v2453_v6, %v292_v21  ;;  %v602_v9 = vld [vmem:[#allocation4 + $0x498] sm:$0xff]  ;;  %v355_v13 = vld [vmem:[#allocation4 + $0x220] sm:$0xff] }
  0x44   : > { %v2516_v15 = vadd.f32 %v616_v18, %v574_v61  ;;  %v327_v18 = vadd.f32 %v307_v1, %v265_v17  ;;  %v577_v41 = vadd.f32 %v557_v11, %v515_v29  ;;  %v375_v44 = vmul.f32 %v2455_v8, %v354_v27  ;;  %v293_v1 = vld [vmem:[#allocation4 + $0x180] sm:$0xff]  ;;  %v477_v11 = vld [vmem:[#allocation4 + $0x350] sm:$0xff] }
  0x45   : > { %v271_v43 = vadd.f32 %v251_v31, %v209_v26  ;;  %v661_v46 = vmul.f32 0.1, %v2524_v37  ;;  %v555_v49 = vmul.f32 %v2461_v14, %v534_v30  ;;  %v437_v50 = vmul.f32 %v2457_v10, %v416_v32  ;;  %v417_v27 = vld [vmem:[#allocation4 + $0x2c0] sm:$0xff]  ;;  %v233_v29 = vld [vmem:[#allocation4 + $0xf0] sm:$0xff] }
  0x46   : > { %v656_v28 = vmul.f32 0.1, %v2516_v15  ;;  %v389_v42 = vadd.f32 %v369_v19, %v327_v18  ;;  %v208_v52 = vmul.f32 %v2449_v3, %v187_v33  ;;  %v2533_v53 = vadd.f32 %v619_v24, %v577_v41  ;;  %v539_v19 = vld [vmem:[#allocation4 + $0x3f0] sm:$0xff]  ;;  %v479_v41 = vld [vmem:[#allocation4 + $0x360] sm:$0xff] }
  0x47   : > { %v333_v57 = vadd.f32 %v313_v39, %v271_v43  ;;  %v250_v58 = vmul.f32 %v2451_v4, %v229_v40  ;;  %v617_v61 = vmul.f32 %v2467_v22, %v596_v34  ;;  %v499_v62 = vmul.f32 %v2459_v12, %v478_v47  ;;  %v295_v33 = vld [vmem:[#allocation4 + $0x190] sm:$0xff] }
  0x48   : > { %676 = vadd.xlane.f32.xlu0 %v656_v28  ;;  %v451_v54 = vadd.f32 %v431_v25, %v389_v42  ;;  %v312_v63 = vmul.f32 %v2453_v6, %v291_v48  ;;  %v374_v0 = vmul.f32 %v2455_v8, %v353_v35  ;;  %v659_v2 = vmul.f32 0.1, %v2533_v53  ;;  %v191_v28 = vld [vmem:[#allocation4 + $0x50] sm:$0xff]  ;;  %v541_v48 = vld [vmem:[#allocation4 + $0x400] sm:$0xff] }
  0x49   : > { %686 = vadd.xlane.f32.xlu2 %v661_v46  ;;  %v395_v7 = vadd.f32 %v375_v44, %v333_v57  ;;  %v270_v56 = vadd.f32 %v250_v58, %v208_v52  ;;  %v561_v16 = vmul.f32 %v2461_v14, %v540_v51  ;;  %v436_v17 = vmul.f32 %v2457_v10, %v415_v36  ;;  %v357_v42 = vld [vmem:[#allocation4 + $0x230] sm:$0xff]  ;;  %v190_v57 = vld [vmem:[#allocation4 + $0x48] sm:$0xff] }
  0x4a   : > { %v513_v5 = vadd.f32 %v493_v38, %v451_v54  ;;  %v210_v20 = vmul.f32 %v2449_v3, %v189_v55  ;;  %v252_v21 = vmul.f32 %v2451_v4, %v231_v60  ;;  %682 = vadd.xlane.f32.xlu1 %v659_v2  ;;  %v314_v26 = vmul.f32 %v2453_v6, %v293_v1  ;;  %v601_v43 = vld [vmem:[#allocation4 + $0x490] sm:$0xff] }
  0x4b   : > { %v457_v24 = vadd.f32 %v437_v50, %v395_v7  ;;  %v332_v25 = vadd.f32 %v312_v63, %v270_v56  ;;  %v623_v18 = vmul.f32 %v2467_v22, %v602_v9  ;;  %v498_v30 = vmul.f32 %v2459_v12, %v477_v11  ;;  %v419_v54 = vld [vmem:[#allocation4 + $0x2d0] sm:$0xff] }
  0x4c   : > { %v575_v23 = vadd.f32 %v555_v49, %v513_v5  ;;  %v272_v31 = vadd.f32 %v252_v21, %v210_v20  ;;  %v376_v32 = vmul.f32 %v2455_v8, %v355_v13  ;;  %v560_v40 = vmul.f32 %v2461_v14, %v539_v19  ;;  %v603_v5 = vld [vmem:[#allocation4 + $0x4a0] sm:$0xff]  ;;  %v481_v7 = vld [vmem:[#allocation4 + $0x370] sm:$0xff] }
  0x4d   : > { %v519_v34 = vadd.f32 %v499_v62, %v457_v24  ;;  %v394_v39 = vadd.f32 %v374_v0, %v332_v25  ;;  %v438_v47 = vmul.f32 %v2457_v10, %v417_v27  ;;  %v212_v35 = vmul.f32 %v2449_v3, %v191_v28  ;;  %v294_v62 = vld [vmem:[#allocation4 + $0x188] sm:$0xff]  ;;  %v543_v13 = vld [vmem:[#allocation4 + $0x410] sm:$0xff]  ;;  %v192_v25 = vld [vmem:[#allocation4 + $0x58] sm:$0xff] }
  0x4e   : > { %v2549_v38 = vadd.f32 %v617_v61, %v575_v23  ;;  %v334_v44 = vadd.f32 %v314_v26, %v272_v31  ;;  %v254_v46 = vmul.f32 %v2451_v4, %v233_v29  ;;  %v316_v52 = vmul.f32 %v2453_v6, %v295_v33  ;;  %v232_v61 = vld [vmem:[#allocation4 + $0xe8] sm:$0xff]  ;;  %v605_v33 = vld [vmem:[#allocation4 + $0x4b0] sm:$0xff] }
  0x4f   : > { %v581_v50 = vadd.f32 %v561_v16, %v519_v34  ;;  %v456_v51 = vadd.f32 %v436_v17, %v394_v39  ;;  %v500_v36 = vmul.f32 %v2459_v12, %v479_v41  ;;  %v378_v60 = vmul.f32 %v2455_v8, %v357_v42  ;;  %v356_v17 = vld [vmem:[#allocation4 + $0x228] sm:$0xff] }
  0x50   : > { %v657_v49 = vmul.f32 0.1, %v2549_v38  ;;  %v396_v58 = vadd.f32 %v376_v32, %v334_v44  ;;  %v274_v55 = vadd.f32 %v254_v46, %v212_v35  ;;  %v622_v1 = vmul.f32 %v2467_v22, %v601_v43  ;;  %v418_v24 = vld [vmem:[#allocation4 + $0x2c8] sm:$0xff] }
  0x51   : > { %v2559_v63 = vadd.f32 %v623_v18, %v581_v50  ;;  %v518_v0 = vadd.f32 %v498_v30, %v456_v51  ;;  %v562_v2 = vmul.f32 %v2461_v14, %v541_v48  ;;  %v440_v11 = vmul.f32 %v2457_v10, %v419_v54  ;;  %v234_v18 = vld [vmem:[#allocation4 + $0xf8] sm:$0xff]  ;;  %v542_v44 = vld [vmem:[#allocation4 + $0x408] sm:$0xff] }
  0x52   : > { %678 = vadd.xlane.f32.xlu0 %v657_v49  ;;  %v458_v9 = vadd.f32 %v438_v47, %v396_v58  ;;  %v336_v56 = vadd.f32 %v316_v52, %v274_v55  ;;  %v211_v16 = vmul.f32 %v2449_v3, %v190_v57  ;;  %v253_v21 = vmul.f32 %v2451_v4, %v232_v61  ;;  %v296_v30 = vld [vmem:[#allocation4 + $0x198] sm:$0xff]  ;;  %v194_v52 = vld [vmem:[#allocation4 + $0x68] sm:$0xff] }
  0x53   : > { %v663_v19 = vmul.f32 0.1, %v2559_v63  ;;  %v580_v20 = vadd.f32 %v560_v40, %v518_v0  ;;  %v315_v23 = vmul.f32 %v2453_v6, %v294_v62  ;;  %v624_v27 = vmul.f32 %v2467_v22, %v603_v5  ;;  %v480_v40 = vld [vmem:[#allocation4 + $0x368] sm:$0xff]  ;;  %v358_v48 = vld [vmem:[#allocation4 + $0x238] sm:$0xff] }
  0x54   : > { %v520_v26 = vadd.f32 %v500_v36, %v458_v9  ;;  %v398_v28 = vadd.f32 %v378_v60, %v336_v56  ;;  %v502_v29 = vmul.f32 %v2459_v12, %v481_v7  ;;  %v564_v32 = vmul.f32 %v2461_v14, %v543_v13  ;;  %v420_v51 = vld [vmem:[#allocation4 + $0x2d8] sm:$0xff]  ;;  %v236_v55 = vld [vmem:[#allocation4 + $0x108] sm:$0xff] }
  0x55   : > { %690 = vadd.xlane.f32.xlu1 %v663_v19  ;;  %v2570_v31 = vadd.f32 %v622_v1, %v580_v20  ;;  %v273_v34 = vadd.f32 %v253_v21, %v211_v16  ;;  %v377_v39 = vmul.f32 %v2455_v8, %v356_v17  ;;  %v439_v43 = vmul.f32 %v2457_v10, %v418_v24  ;;  %v298_v60 = vld [vmem:[#allocation4 + $0x1a8] sm:$0xff]  ;;  %v482_v5 = vld [vmem:[#allocation4 + $0x378] sm:$0xff]  ;;  %v193_v24 = vld [vmem:[#allocation4 + $0x60] sm:$0xff] }
  0x56   : > { %v582_v41 = vadd.f32 %v562_v2, %v520_v26  ;;  %v460_v42 = vadd.f32 %v440_v11, %v398_v28  ;;  %v213_v47 = vmul.f32 %v2449_v3, %v192_v25  ;;  %v255_v49 = vmul.f32 %v2451_v4, %v234_v18  ;;  %v604_v0 = vld [vmem:[#allocation4 + $0x4a8] sm:$0xff]  ;;  %v544_v7 = vld [vmem:[#allocation4 + $0x418] sm:$0xff]  ;;  %v235_v25 = vld [vmem:[#allocation4 + $0x100] sm:$0xff] }
  0x57   : > { %v662_v35 = vmul.f32 0.1, %v2570_v31  ;;  %v335_v46 = vadd.f32 %v315_v23, %v273_v34  ;;  %v317_v50 = vmul.f32 %v2453_v6, %v296_v30  ;;  %v626_v58 = vmul.f32 %v2467_v22, %v605_v33  ;;  %v360_v16 = vld [vmem:[#allocation4 + $0x248] sm:$0xff]  ;;  %v297_v18 = vld [vmem:[#allocation4 + $0x1a0] sm:$0xff]  ;;  %v606_v33 = vld [vmem:[#allocation4 + $0x4b8] sm:$0xff] }
  0x58   : > { %v2579_v54 = vadd.f32 %v624_v27, %v582_v41  ;;  %v522_v57 = vadd.f32 %v502_v29, %v460_v42  ;;  %v501_v36 = vmul.f32 %v2459_v12, %v480_v40  ;;  %v563_v62 = vmul.f32 %v2461_v14, %v542_v44  ;;  %v422_v23 = vld [vmem:[#allocation4 + $0x2e8] sm:$0xff]  ;;  %v359_v41 = vld [vmem:[#allocation4 + $0x240] sm:$0xff] }
  0x59   : > { %v397_v61 = vadd.f32 %v377_v39, %v335_v46  ;;  %v275_v1 = vadd.f32 %v255_v49, %v213_v47  ;;  %v379_v2 = vmul.f32 %v2455_v8, %v358_v48  ;;  %v441_v11 = vmul.f32 %v2457_v10, %v420_v51  ;;  %v484_v40 = vld [vmem:[#allocation4 + $0x388] sm:$0xff]  ;;  %v421_v51 = vld [vmem:[#allocation4 + $0x2e0] sm:$0xff] }
  0x5a   : > { %688 = vadd.xlane.f32.xlu0 %v662_v35  ;;  %v664_v9 = vmul.f32 0.1, %v2579_v54  ;;  %v584_v56 = vadd.f32 %v564_v32, %v522_v57  ;;  %v215_v13 = vmul.f32 %v2449_v3, %v194_v52  ;;  %v257_v20 = vmul.f32 %v2451_v4, %v236_v55  ;;  %v546_v44 = vld [vmem:[#allocation4 + $0x428] sm:$0xff]  ;;  %v195_v52 = vld [vmem:[#allocation4 + $0x70] sm:$0xff] }
  0x5b   : > { %v459_v17 = vadd.f32 %v439_v43, %v397_v61  ;;  %v337_v19 = vadd.f32 %v317_v50, %v275_v1  ;;  %v319_v21 = vmul.f32 %v2453_v6, %v298_v60  ;;  %v625_v27 = vmul.f32 %v2467_v22, %v604_v0  ;;  %v237_v57 = vld [vmem:[#allocation4 + $0x110] sm:$0xff] }
  0x5c   : > { %692 = vadd.xlane.f32.xlu2 %v664_v9  ;;  %v2590_v26 = vadd.f32 %v626_v58, %v584_v56  ;;  %v503_v28 = vmul.f32 %v2459_v12, %v482_v5  ;;  %v565_v29 = vmul.f32 %v2461_v14, %v544_v7  ;;  %v277_v34 = vadd.f32 %v257_v20, %v215_v13  ;;  %v299_v61 = vld [vmem:[#allocation4 + $0x1b0] sm:$0xff]  ;;  %v483_v5 = vld [vmem:[#allocation4 + $0x380] sm:$0xff]  ;;  %v608_v9 = vld [vmem:[#allocation4 + $0x4c8] sm:$0xff] }
  0x5d   : > { %v521_v30 = vadd.f32 %v501_v36, %v459_v17  ;;  %v399_v32 = vadd.f32 %v379_v2, %v337_v19  ;;  %v381_v39 = vmul.f32 %v2455_v8, %v360_v16  ;;  %v443_v43 = vmul.f32 %v2457_v10, %v422_v23  ;;  %v361_v7 = vld [vmem:[#allocation4 + $0x250] sm:$0xff]  ;;  %v545_v13 = vld [vmem:[#allocation4 + $0x420] sm:$0xff] }
  0x5e   : > { %v666_v42 = vmul.f32 0.1, %v2590_v26  ;;  %v214_v47 = vmul.f32 %v2449_v3, %v193_v24  ;;  %v256_v48 = vmul.f32 %v2451_v4, %v235_v25  ;;  %v339_v49 = vadd.f32 %v319_v21, %v277_v34  ;;  %v423_v24 = vld [vmem:[#allocation4 + $0x2f0] sm:$0xff]  ;;  %v197_v25 = vld [vmem:[#allocation4 + $0x80] sm:$0xff] }
  0x5f   : > { %v583_v35 = vadd.f32 %v563_v62, %v521_v30  ;;  %v461_v46 = vadd.f32 %v441_v11, %v399_v32  ;;  %v318_v50 = vmul.f32 %v2453_v6, %v297_v18  ;;  %v627_v58 = vmul.f32 %v2467_v22, %v606_v33  ;;  %v239_v32 = vld [vmem:[#allocation4 + $0x120] sm:$0xff] }
  0x60   : > { %696 = vadd.xlane.f32.xlu1 %v666_v42  ;;  %v505_v36 = vmul.f32 %v2459_v12, %v484_v40  ;;  %v276_v55 = vadd.f32 %v256_v48, %v214_v47  ;;  %v380_v60 = vmul.f32 %v2455_v8, %v359_v41  ;;  %v401_v62 = vadd.f32 %v381_v39, %v339_v49  ;;  %v301_v33 = vld [vmem:[#allocation4 + $0x1c0] sm:$0xff]  ;;  %v485_v42 = vld [vmem:[#allocation4 + $0x390] sm:$0xff] }
  0x61   : > { %v2604_v0 = vadd.f32 %v625_v27, %v583_v35  ;;  %v523_v1 = vadd.f32 %v503_v28, %v461_v46  ;;  %v567_v2 = vmul.f32 %v2461_v14, %v546_v44  ;;  %v442_v11 = vmul.f32 %v2457_v10, %v421_v51  ;;  %v607_v41 = vld [vmem:[#allocation4 + $0x4c0] sm:$0xff]  ;;  %v547_v48 = vld [vmem:[#allocation4 + $0x430] sm:$0xff] }
  0x62   : > { %v338_v56 = vadd.f32 %v318_v50, %v276_v55  ;;  %v216_v16 = vmul.f32 %v2449_v3, %v195_v52  ;;  %v258_v17 = vmul.f32 %v2451_v4, %v237_v57  ;;  %v463_v21 = vadd.f32 %v443_v43, %v401_v62  ;;  %v363_v46 = vld [vmem:[#allocation4 + $0x260] sm:$0xff]  ;;  %v300_v62 = vld [vmem:[#allocation4 + $0x1b8] sm:$0xff] }
  0x63   : > { %v665_v19 = vmul.f32 0.1, %v2604_v0  ;;  %v585_v20 = vadd.f32 %v565_v29, %v523_v1  ;;  %v320_v23 = vmul.f32 %v2453_v6, %v299_v61  ;;  %v504_v28 = vmul.f32 %v2459_v12, %v483_v5  ;;  %v425_v57 = vld [vmem:[#allocation4 + $0x300] sm:$0xff]  ;;  %v238_v1 = vld [vmem:[#allocation4 + $0x118] sm:$0xff] }
  0x64   : > { %v400_v27 = vadd.f32 %v380_v60, %v338_v56  ;;  %v278_v18 = vadd.f32 %v258_v17, %v216_v16  ;;  %v382_v30 = vmul.f32 %v2455_v8, %v361_v7  ;;  %v525_v39 = vadd.f32 %v505_v36, %v463_v21  ;;  %v362_v21 = vld [vmem:[#allocation4 + $0x258] sm:$0xff] }
  0x65   : > { %694 = vadd.xlane.f32.xlu0 %v665_v19  ;;  %v2614_v34 = vadd.f32 %v627_v58, %v585_v20  ;;  %v629_v40 = vmul.f32 %v2467_v22, %v608_v9  ;;  %v566_v29 = vmul.f32 %v2461_v14, %v545_v13  ;;  %v444_v47 = vmul.f32 %v2457_v10, %v423_v24  ;;  %v196_v58 = vld [vmem:[#allocation4 + $0x78] sm:$0xff]  ;;  %v549_v19 = vld [vmem:[#allocation4 + $0x440] sm:$0xff] }
  0x66   : > { %v462_v43 = vadd.f32 %v442_v11, %v400_v27  ;;  %v340_v44 = vadd.f32 %v320_v23, %v278_v18  ;;  %v218_v35 = vmul.f32 %v2449_v3, %v197_v25  ;;  %v587_v50 = vadd.f32 %v567_v2, %v525_v39  ;;  %v609_v2 = vld [vmem:[#allocation4 + $0x4d0] sm:$0xff]  ;;  %v487_v11 = vld [vmem:[#allocation4 + $0x3a0] sm:$0xff]  ;;  %v198_v18 = vld [vmem:[#allocation4 + $0x88] sm:$0xff] }
  0x67   : > { %v667_v49 = vmul.f32 0.1, %v2614_v34  ;;  %v260_v51 = vmul.f32 %v2451_v4, %v239_v32  ;;  %v322_v52 = vmul.f32 %v2453_v6, %v301_v33  ;;  %v628_v55 = vmul.f32 %v2467_v22, %v607_v41 }
  0x68   : > { %v524_v36 = vadd.f32 %v504_v28, %v462_v43  ;;  %v402_v60 = vadd.f32 %v382_v30, %v340_v44  ;;  %v506_v61 = vmul.f32 %v2459_v12, %v485_v42  ;;  %v2625_v5 = vadd.f32 %v629_v40, %v587_v50  ;;  %v424_v28 = vld [vmem:[#allocation4 + $0x2f8] sm:$0xff]  ;;  %v240_v40 = vld [vmem:[#allocation4 + $0x128] sm:$0xff]  ;;  %v611_v43 = vld [vmem:[#allocation4 + $0x4e0] sm:$0xff] }
  0x69   : > { %698 = vadd.xlane.f32.xlu2 %v667_v49  ;;  %v568_v7 = vmul.f32 %v2461_v14, %v547_v48  ;;  %v280_v9 = vadd.f32 %v260_v51, %v218_v35  ;;  %v384_v56 = vmul.f32 %v2455_v8, %v363_v46  ;;  %v446_v17 = vmul.f32 %v2457_v10, %v425_v57  ;;  %v486_v48 = vld [vmem:[#allocation4 + $0x398] sm:$0xff] }
  0x6a   : > { %v586_v13 = vadd.f32 %v566_v29, %v524_v36  ;;  %v464_v16 = vadd.f32 %v444_v47, %v402_v60  ;;  %v217_v20 = vmul.f32 %v2449_v3, %v196_v58  ;;  %v669_v23 = vmul.f32 0.1, %v2625_v5  ;;  %v302_v29 = vld [vmem:[#allocation4 + $0x1c8] sm:$0xff]  ;;  %v548_v35 = vld [vmem:[#allocation4 + $0x438] sm:$0xff] }
  0x6b   : > { %v342_v24 = vadd.f32 %v322_v52, %v280_v9  ;;  %v259_v25 = vmul.f32 %v2451_v4, %v238_v1  ;;  %v321_v27 = vmul.f32 %v2453_v6, %v300_v62  ;;  %v630_v33 = vmul.f32 %v2467_v22, %v609_v2  ;;  %v364_v52 = vld [vmem:[#allocation4 + $0x268] sm:$0xff]  ;;  %v242_v1 = vld [vmem:[#allocation4 + $0x138] sm:$0xff] }
  0x6c   : > { %v2634_v30 = vadd.f32 %v628_v55, %v586_v13  ;;  %v526_v32 = vadd.f32 %v506_v61, %v464_v16  ;;  %v508_v39 = vmul.f32 %v2459_v12, %v487_v11  ;;  %702 = vadd.xlane.f32.xlu1 %v669_v23  ;;  %v570_v42 = vmul.f32 %v2461_v14, %v549_v19  ;;  %v426_v60 = vld [vmem:[#allocation4 + $0x308] sm:$0xff]  ;;  %v200_v61 = vld [vmem:[#allocation4 + $0x98] sm:$0xff] }
  0x6d   : > { %v404_v41 = vadd.f32 %v384_v56, %v342_v24  ;;  %v279_v44 = vadd.f32 %v259_v25, %v217_v20  ;;  %v383_v47 = vmul.f32 %v2455_v8, %v362_v21  ;;  %v445_v50 = vmul.f32 %v2457_v10, %v424_v28  ;;  %v304_v56 = vld [vmem:[#allocation4 + $0x1d8] sm:$0xff]  ;;  %v488_v20 = vld [vmem:[#allocation4 + $0x3a8] sm:$0xff] }
  0x6e   : > { %v668_v46 = vmul.f32 0.1, %v2634_v30  ;;  %v588_v49 = vadd.f32 %v568_v7, %v526_v32  ;;  %v219_v51 = vmul.f32 %v2449_v3, %v198_v18  ;;  %v261_v36 = vmul.f32 %v2451_v4, %v240_v40  ;;  %v610_v16 = vld [vmem:[#allocation4 + $0x4d8] sm:$0xff]  ;;  %v550_v25 = vld [vmem:[#allocation4 + $0x448] sm:$0xff] }
  0x6f   : > { %v466_v57 = vadd.f32 %v446_v17, %v404_v41  ;;  %v341_v58 = vadd.f32 %v321_v27, %v279_v44  ;;  %v323_v55 = vmul.f32 %v2453_v6, %v302_v29  ;;  %v632_v2 = vmul.f32 %v2467_v22, %v611_v43  ;;  %v366_v21 = vld [vmem:[#allocation4 + $0x278] sm:$0xff]  ;;  %v199_v29 = vld [vmem:[#allocation4 + $0x90] sm:$0xff] }
  0x70   : > { %700 = vadd.xlane.f32.xlu0 %v668_v46  ;;  %v2645_v62 = vadd.f32 %v630_v33, %v588_v49  ;;  %v507_v7 = vmul.f32 %v2459_v12, %v486_v48  ;;  %v569_v9 = vmul.f32 %v2461_v14, %v548_v35  ;;  %v281_v17 = vadd.f32 %v261_v36, %v219_v51  ;;  %v428_v40 = vld [vmem:[#allocation4 + $0x318] sm:$0xff]  ;;  %v241_v41 = vld [vmem:[#allocation4 + $0x130] sm:$0xff] }
  0x71   : > { %v528_v11 = vadd.f32 %v508_v39, %v466_v57  ;;  %v403_v13 = vadd.f32 %v383_v47, %v341_v58  ;;  %v385_v19 = vmul.f32 %v2455_v8, %v364_v52  ;;  %v447_v24 = vmul.f32 %v2457_v10, %v426_v60  ;;  %v303_v35 = vld [vmem:[#allocation4 + $0x1d0] sm:$0xff]  ;;  %v490_v51 = vld [vmem:[#allocation4 + $0x3b8] sm:$0xff]  ;;  %v612_v57 = vld [vmem:[#allocation4 + $0x4e8] sm:$0xff] }
  0x72   : > { %v670_v23 = vmul.f32 0.1, %v2645_v62  ;;  %v221_v27 = vmul.f32 %v2449_v3, %v200_v61  ;;  %v263_v28 = vmul.f32 %v2451_v4, %v242_v1  ;;  %v343_v33 = vadd.f32 %v323_v55, %v281_v17  ;;  %v365_v52 = vld [vmem:[#allocation4 + $0x270] sm:$0xff] }
  0x73   : > { %v590_v18 = vadd.f32 %v570_v42, %v528_v11  ;;  %v465_v32 = vadd.f32 %v445_v50, %v403_v13  ;;  %v325_v39 = vmul.f32 %v2453_v6, %v304_v56  ;;  %v631_v43 = vmul.f32 %v2467_v22, %v610_v16  ;;  %v427_v11 = vld [vmem:[#allocation4 + $0x310] sm:$0xff] }
  0x74   : > { %704 = vadd.xlane.f32.xlu2 %v670_v23  ;;  %v509_v44 = vmul.f32 %v2459_v12, %v488_v20  ;;  %v283_v47 = vadd.f32 %v263_v28, %v221_v27  ;;  %v387_v48 = vmul.f32 %v2455_v8, %v366_v21  ;;  %v405_v42 = vadd.f32 %v385_v19, %v343_v33  ;;  %v614_v21 = vld [vmem:[#allocation4 + $0x4f8] sm:$0xff]  ;;  %v489_v23 = vld [vmem:[#allocation4 + $0x3b0] sm:$0xff] }
  0x75   : > { %v2659_v46 = vadd.f32 %v632_v2, %v590_v18  ;;  %v527_v49 = vadd.f32 %v507_v7, %v465_v32  ;;  %v571_v50 = vmul.f32 %v2461_v14, %v550_v25  ;;  %v449_v36 = vmul.f32 %v2457_v10, %v428_v40  ;;  %v552_v2 = vld [vmem:[#allocation4 + $0x458] sm:$0xff]  ;;  %v551_v18 = vld [vmem:[#allocation4 + $0x450] sm:$0xff] }
  0x76   : > { %v345_v58 = vadd.f32 %v325_v39, %v283_v47  ;;  %v220_v55 = vmul.f32 %v2449_v3, %v199_v29  ;;  %v262_v60 = vmul.f32 %v2451_v4, %v241_v41  ;;  %v467_v56 = vadd.f32 %v447_v24, %v405_v42  ;;  %v613_v29 = vld [vmem:[#allocation4 + $0x4f0] sm:$0xff] }
  0x77   : > { %v672_v61 = vmul.f32 0.1, %v2659_v46  ;;  %v589_v1 = vadd.f32 %v569_v9, %v527_v49  ;;  %v324_v7 = vmul.f32 %v2453_v6, %v303_v35  ;;  %v511_v16 = vmul.f32 %v2459_v12, %v490_v51 }
  0x78   : > { %v407_v13 = vadd.f32 %v387_v48, %v345_v58  ;;  %v282_v17 = vadd.f32 %v262_v60, %v220_v55  ;;  %v386_v19 = vmul.f32 %v2455_v8, %v365_v52  ;;  %v529_v3 = vadd.f32 %v509_v44, %v467_v56 }
  0x79   : > { %708 = vadd.xlane.f32.xlu1 %v672_v61  ;;  %v2669_v20 = vadd.f32 %v631_v43, %v589_v1  ;;  %v633_v4 = vmul.f32 %v2467_v22, %v612_v57  ;;  %v573_v24 = vmul.f32 %v2461_v14, %v552_v2  ;;  %v448_v6 = vmul.f32 %v2457_v10, %v427_v11 }
  0x7a   : > { %v469_v9 = vadd.f32 %v449_v36, %v407_v13  ;;  %v344_v25 = vadd.f32 %v324_v7, %v282_v17  ;;  %v591_v28 = vadd.f32 %v571_v50, %v529_v3  ;;  %v635_v8 = vmul.f32 %v2467_v22, %v614_v21 }
  0x7b   : > { %v671_v27 = vmul.f32 0.1, %v2669_v20  ;;  %v510_v39 = vmul.f32 %v2459_v12, %v489_v23  ;;  %v572_v44 = vmul.f32 %v2461_v14, %v551_v18  ;;  %v634_v35 = vmul.f32 %v2467_v22, %v613_v29 }
  0x7c   : > { %v531_v32 = vadd.f32 %v511_v16, %v469_v9  ;;  %v406_v33 = vadd.f32 %v386_v19, %v344_v25  ;;  %v2677_v40 = vadd.f32 %v633_v4, %v591_v28  ;;  %v756_v1 = vlaneseq }
  0x7d   : > { %706 = vadd.xlane.f32.xlu0 %v671_v27  ;;  %vm792_vm2 = vcmask 1042434   ;;  %vm794_vm3 = vcmask 1043459   ;;  %vm796_vm4 = vcmask 1044484   ;;  %vm798_vm5 = vcmask 1045509  }
  0x7e   : > { %v593_v41 = vadd.f32 %v573_v24, %v531_v32  ;;  %v468_v43 = vadd.f32 %v448_v6, %v406_v33  ;;  %v673_v10 = vmul.f32 0.1, %v2677_v40  ;;  %v2710_v2 = vand.u32 127, %v756_v1 }
  0x7f   : > { %vm800_vm6 = vcmask 1046534   ;;  %vm802_vm7 = vcmask 1047559   ;;  %vm807_vm8 = vcmask 130048   ;;  %vm3359_vm9 = vcmask 123904  }
  0x80   : > { %v2681_v47 = vadd.f32 %v635_v8, %v593_v41  ;;  %v530_v48 = vadd.f32 %v510_v39, %v468_v43  ;;  %710 = vadd.xlane.f32.xlu2 %v673_v10  ;;  %3363 = vst [vmem:[#allocation8_spill] sm:$0xff] %v2710_v2  ;;  %v2715_v11 = vadd.s32 4294967288, %v2710_v2 }
  0x82   : > { %v675_v49 = vmul.f32 0.1, %v2681_v47  ;;  %v592_v42 = vadd.f32 %v572_v44, %v530_v48  ;;  %3364 = vst [vmem:[#allocation9_spill] sm:$0xff] %v2715_v11 }
  0x84   : > { %714 = vadd.xlane.f32.xlu1 %v675_v49  ;;  %v2685_v12 = vadd.f32 %v634_v35, %v592_v42 }
  0x86   : > { %v674_v50 = vmul.f32 0.1, %v2685_v12 }
  0x88   : > { %712 = vadd.xlane.f32.xlu0 %v674_v50 }
  0xb4   : > { %v2692_v52 = vpop.xlane.xlu2 %684 }
  0xb5   : > { %v2688_v51 = vpop.xlane.xlu1 %680  ;;  %v720_v3 = vmul.f32 %v2692_v52, %v2692_v52 }
  0xb6   : > { %v718_v7 = vmul.f32 %v2688_v51, %v2688_v51 }
  0xb7   : > { %v766_v8 = vperm.slane %v720_v3, %v2710_v2 }
  0xb8   : > { %v763_v21 = vperm.slane %v718_v7, %v2710_v2 }
  0xbb   : > { %v2690_v14 = vpop.xlane.xlu0 %676 }
  0xbc   : > { %v2698_v22 = vpop.xlane.xlu2 %686  ;;  %v716_v17 = vmul.f32 %v2690_v14, %v2690_v14 }
  0xbd   : > { %v2694_v57 = vpop.xlane.xlu1 %682  ;;  %v721_v23 = vmul.f32 %v2698_v22, %v2698_v22 }
  0xbe   : > { %v719_v13 = vmul.f32 %v2694_v57, %v2694_v57  ;;  %v758_v27 = vperm.slane %v716_v17, %v2710_v2 }
  0xbf   : > { %v767_v33 = vperm.slane %v721_v23, %v2715_v11 }
  0xc0   : > { %v764_v9 = vperm.slane %v719_v13, %v2715_v11 }
  0xc1   : > { %v768_v1 = vsel %vm761_vm0, %v767_v33, %v766_v8 }
  0xc2   : > { %v765_v39 = vsel %vm761_vm0, %v764_v9, %v763_v21 }
  0xc5   : > { %v2696_v58 = vpop.xlane.xlu0 %678 }
  0xc6   : > { %v717_v16 = vmul.f32 %v2696_v58, %v2696_v58 }
  0xc8   : > { %v2700_v36 = vpop.xlane.xlu1 %690  ;;  %v760_v24 = vperm.slane %v717_v16, %v2715_v11 }
  0xc9   : > { %v723_v25 = vmul.f32 %v2700_v36, %v2700_v36 }
  0xca   : > { %v762_v29 = vsel %vm761_vm0, %v760_v24, %v758_v27 }
  0xcb   : > { %v770_v41 = vperm.slane %v723_v25, %v2715_v11  ;;  %v791_v7 = vsel %vm790_vm1, %v765_v39, %v762_v29 }
  0xcc   : > { %v793_v25 = vsel %vm792_vm2, %v768_v1, %v791_v7 }
  0xcd   : > { %v2702_v55 = vpop.xlane.xlu0 %688 }
  0xce   : > { %v722_v6 = vmul.f32 %v2702_v55, %v2702_v55 }
  0xcf   : > { %v2704_v60 = vpop.xlane.xlu2 %692 }
  0xd0   : > { %v724_v28 = vmul.f32 %v2704_v60, %v2704_v60  ;;  %v769_v43 = vperm.slane %v722_v6, %v2710_v2 }
  0xd2   : > { %v772_v48 = vperm.slane %v724_v28, %v2710_v2  ;;  %v771_v13 = vsel %vm761_vm0, %v770_v41, %v769_v43 }
  0xd3   : > { %v2706_v61 = vpop.xlane.xlu1 %696  ;;  %v795_v27 = vsel %vm794_vm3, %v771_v13, %v793_v25 }
  0xd4   : > { %v726_v44 = vmul.f32 %v2706_v61, %v2706_v61 }
  0xd6   : > { %v775_v16 = vperm.slane %v726_v44, %v2710_v2 }
  0xd8   : > { %v2708_v56 = vpop.xlane.xlu0 %694 }
  0xd9   : > { %v725_v18 = vmul.f32 %v2708_v56, %v2708_v56 }
  0xdb   : > { %v773_v35 = vperm.slane %v725_v18, %v2715_v11 }
  0xdc   : > { %v2723_v19 = vpop.xlane.xlu2 %698 }
  0xdd   : > { %v727_v10 = vmul.f32 %v2723_v19, %v2723_v19  ;;  %v774_v23 = vsel %vm761_vm0, %v773_v35, %v772_v48 }
  0xde   : > { %v797_v33 = vsel %vm796_vm4, %v774_v23, %v795_v27 }
  0xdf   : > { %v2727_v4 = vpop.xlane.xlu1 %702  ;;  %v776_v17 = vperm.slane %v727_v10, %v2715_v11 }
  0xe0   : > { %v729_v49 = vmul.f32 %v2727_v4, %v2727_v4 }
  0xe1   : > { %v777_v8 = vsel %vm761_vm0, %v776_v17, %v775_v16 }
  0xe2   : > { %v779_v9 = vperm.slane %v729_v49, %v2715_v11  ;;  %v799_v43 = vsel %vm798_vm5, %v777_v8, %v797_v33 }
  0xe3   : > { %v2743_v32 = vpop.xlane.xlu0 %700 }
  0xe4   : > { %v728_v42 = vmul.f32 %v2743_v32, %v2743_v32 }
  0xe6   : > { %v778_v24 = vperm.slane %v728_v42, %v2710_v2 }
  0xe7   : > { %v2761_v50 = vpop.xlane.xlu2 %704 }
  0xe8   : > { %v730_v3 = vmul.f32 %v2761_v50, %v2761_v50  ;;  %v780_v39 = vsel %vm761_vm0, %v779_v9, %v778_v24 }
  0xe9   : > { %v801_v10 = vsel %vm800_vm6, %v780_v39, %v799_v43 }
  0xea   : > { %v781_v28 = vperm.slane %v730_v3, %v2710_v2 }
  0xec   : > { %v2770_v21 = vpop.xlane.xlu1 %708 }
  0xed   : > { %v732_v48 = vmul.f32 %v2770_v21, %v2770_v21 }
  0xef   : > { %v784_v13 = vperm.slane %v732_v48, %v2710_v2 }
  0xf0   : > { %v2776_v6 = vpop.xlane.xlu0 %706 }
  0xf1   : > { %v731_v18 = vmul.f32 %v2776_v6, %v2776_v6 }
  0xf3   : > { %v782_v29 = vperm.slane %v731_v18, %v2715_v11  ;;  %v2786_v41 = vpop.xlane.xlu2 %710  ;;  %v2348_v18 = vmov 0  }
  0xf4   : > { %v733_v35 = vmul.f32 %v2786_v41, %v2786_v41  ;;  %2176 = vset.pattern.permute.xlu0 %v2348_v18  ;;  %2175 = vset.pattern.permute.xlu1 %v2348_v18 }
  0xf5   : > { %v783_v44 = vsel %vm761_vm0, %v782_v29, %v781_v28  ;;  %2174 = vset.pattern.permute.xlu2 %v2348_v18 }
  0xf6   : > { %v803_v49 = vsel %vm802_vm7, %v783_v44, %v801_v10  ;;  %v785_v16 = vperm.slane %v733_v35, %v2715_v11 }
  0xf7   : > { %v2796_v42 = vpop.xlane.xlu1 %714  ;;  %v808_v1 = vsel %vm807_vm8, %v803_v49, 0.0 }
  0xf8   : > { %v735_v7 = vmul.f32 %v2796_v42, %v2796_v42  ;;  %809 = vadd.xlane.f32.xlu2 %v808_v1  ;;  %v786_v24 = vsel %vm761_vm0, %v785_v16, %v784_v13 }
  0xfa   : > { %v788_v3 = vperm.slane %v735_v7, %v2715_v11 }
  0xfb   : > { %v2803_v17 = vpop.xlane.xlu0 %712 }
  0xfc   : > { %v734_v23 = vmul.f32 %v2803_v17, %v2803_v17 }
  0xfe   : > { %v787_v9 = vperm.slane %v734_v23, %v2710_v2 }
 0x100   : > { %v789_v25 = vsel %vm761_vm0, %v788_v3, %v787_v9 }
 0x101   : > { %v804_v27 = vsel %vm790_vm1, %v789_v25, %v786_v24 }
 0x102   : > { %v812_v28 = vsel %vm3359_vm9, %v804_v27, 0.0 }
 0x103   : > { %813 = vadd.xlane.f32.xlu0 %v812_v28 }
 0x16b   : > { %v810_v8 = vpop.xlane.xlu2 %809 }
 0x16c   : > { %v821_v33 = vadd.f32 1e-09, %v810_v8  ;;  %v815_v39 = vadd.f32 1.0, %v810_v8 }
 0x16e   : > { %2177 = vrsqrt.f32 %v821_v33  ;;  %vm829_vm11 = vweird.f32 %v821_v33 }
 0x16f   : > { %2179 = vrcp.f32 %v815_v39 }
 0x174   : > { %v2178_v29 = vpop.eup %2177 }
 0x175   : > { %v824_v43 = vmul.f32 %v2178_v29, %v821_v33  ;;  %v2180_v49 = vpop.eup %2179  ;;  %vm830_vm10 = vweird.f32 %v2178_v29 }
 0x176   : > { %v814_v44 = vpop.xlane.xlu0 %813  ;;  %v819_v16 = vmul.f32 %v2180_v49, %v810_v8  ;;  %vm831_vm12 = vmor %vm829_vm11, %vm830_vm10  ;;  %vm1144_vm10 = vcmask 1041408  }
 0x177   : > { %v822_v10 = vadd.f32 1e-09, %v814_v44  ;;  %v825_v48 = vmul.f32 %v2178_v29, %v824_v43  ;;  %v816_v7 = vadd.f32 1.0, %v814_v44 }
 0x179   : > { %v826_v35 = vmul.f32 0.5, %v825_v48  ;;  %2181 = vrsqrt.f32 %v822_v10  ;;  %vm839_vm14 = vweird.f32 %v822_v10 }
 0x17a   : > { %2183 = vrcp.f32 %v816_v7 }
 0x17b   : > { %v827_v1 = vsub.f32 1.5, %v826_v35 }
 0x17d   : > { %v828_v13 = vmul.f32 %v2178_v29, %v827_v1 }
 0x17f   : > { %v2182_v3 = vpop.eup %2181  ;;  %v832_v23 = vsel %vm831_vm12, %v2178_v29, %v828_v13 }
 0x180   : > { %v843_v9 = vmul.f32 %v832_v23, %v819_v16  ;;  %v834_v24 = vmul.f32 %v2182_v3, %v822_v10  ;;  %v2184_v48 = vpop.eup %2183  ;;  %vm840_vm13 = vweird.f32 %v2182_v3 }
 0x181   : > { %v820_v49 = vmul.f32 %v2184_v48, %v814_v44  ;;  %vm841_vm15 = vmor %vm839_vm14, %vm840_vm13 }
 0x182   : > { %v835_v25 = vmul.f32 %v2182_v3, %v834_v24  ;;  %v847_v27 = vperm.slane %v843_v9, 0  ;;  %v848_v28 = vperm.slane %v843_v9, 1  ;;  %v851_v33 = vperm.slane %v843_v9, 4 }
 0x183   : > { %v849_v29 = vperm.slane %v843_v9, 2  ;;  %v852_v23 = vperm.slane %v843_v9, 5  ;;  %v853_v24 = vperm.slane %v843_v9, 6 }
 0x184   : > { %v836_v18 = vmul.f32 0.5, %v835_v25  ;;  %v867_v39 = vmul.f32 %v847_v27, %v2690_v14  ;;  %v869_v43 = vmul.f32 %v848_v28, %v2688_v51  ;;  %v875_v13 = vmul.f32 %v851_v33, %v2704_v60 }
 0x185   : > { %v872_v16 = vmul.f32 %v849_v29, %v2698_v22  ;;  %v877_v10 = vmul.f32 %v852_v23, %v2706_v61  ;;  %v879_v25 = vmul.f32 %v853_v24, %v2743_v32  ;;  %v868_v44 = vmul.f32 %v847_v27, %v2696_v58 }
 0x186   : > { %v837_v35 = vsub.f32 1.5, %v836_v18  ;;  %889 = vperm.xlu1 %2175, %v867_v39   ;;  %899 = vperm.xlu0 %2176, %v869_v43   ;;  %v871_v22 = vmul.f32 %v849_v29, %v2692_v52  ;;  %v850_v18 = vperm.slane %v843_v9, 3  ;;  %v876_v58 = vmul.f32 %v851_v33, %v2708_v56 }
 0x188   : > { %v838_v8 = vmul.f32 %v2182_v3, %v837_v35  ;;  %v874_v61 = vmul.f32 %v850_v18, %v2700_v36  ;;  %v880_v36 = vmul.f32 %v853_v24, %v2727_v4 }
 0x18a   : > { %v842_v1 = vsel %vm841_vm15, %v2182_v3, %v838_v8  ;;  %v854_v3 = vperm.slane %v843_v9, 7  ;;  %v873_v9 = vmul.f32 %v850_v18, %v2702_v55 }
 0x18b   : > { %v844_v7 = vmul.f32 %v842_v1, %v820_v49 }
 0x18c   : > { %v882_v60 = vmul.f32 %v854_v3, %v2776_v6  ;;  %v881_v52 = vmul.f32 %v854_v3, %v2761_v50  ;;  %v878_v6 = vmul.f32 %v852_v23, %v2723_v19 }
 0x18d   : > { %v855_v14 = vperm.slane %v844_v7, 0  ;;  %v856_v39 = vperm.slane %v844_v7, 1 }
 0x18e   : > { %929 = vperm.xlu1 %2175, %v875_v13   ;;  %914 = vperm.xlu0 %2176, %v872_v16  }
 0x18f   : > { %v883_v51 = vmul.f32 %v855_v14, %v2770_v21  ;;  %v870_v21 = vmul.f32 %v848_v28, %v2694_v57  ;;  %v885_v32 = vmul.f32 %v856_v39, %v2803_v17  ;;  %v884_v57 = vmul.f32 %v855_v14, %v2786_v41 }
 0x190   : > { %v886_v17 = vmul.f32 %v856_v39, %v2796_v42 }
 0x191   : > { %969 = vperm.xlu2 %2174, %v883_v51  }
 0x196   : > { %939 = vperm.xlu1 %2175, %v877_v10   ;;  %949 = vperm.xlu0 %2176, %v879_v25  }
 0x199   : > { %894 = vperm.xlu2 %2174, %v868_v44  }
 0x19e   : > { %909 = vperm.xlu1 %2175, %v871_v22   ;;  %964 = vperm.xlu0 %2176, %v882_v60  }
 0x1a1   : > { %904 = vperm.xlu2 %2174, %v870_v21  }
 0x1a6   : > { %924 = vperm.xlu1 %2175, %v874_v61   ;;  %979 = vperm.xlu0 %2176, %v885_v32  }
 0x1a9   : > { %934 = vperm.xlu2 %2174, %v876_v58  }
 0x1ae   : > { %959 = vperm.xlu1 %2175, %v881_v52  }
 0x1b1   : > { %944 = vperm.xlu2 %2174, %v878_v6  }
 0x1b6   : > { %974 = vperm.xlu1 %2175, %v884_v57  }
 0x1b9   : > { %919 = vperm.xlu2 %2174, %v873_v9  }
 0x1c1   : > { %954 = vperm.xlu2 %2174, %v880_v36  }
 0x1c9   : > { %984 = vperm.xlu2 %2174, %v886_v17  }
 0x1eb   : > { %v2833_v56 = vpop.permute.xlu2 %969 }
 0x1f3   : > { %v895_v27 = vpop.permute.xlu2 %894 }
 0x1f4   : > { %v988_v24 = vmul.f32 %v895_v27, %v2549_v38 }
 0x1f8   : > { %v890_v50 = vpop.permute.xlu1 %889  ;;  %v900_v28 = vpop.permute.xlu0 %899 }
 0x1f9   : > { %v987_v13 = vmul.f32 %v890_v50, %v2516_v15  ;;  %v989_v14 = vmul.f32 %v900_v28, %v2508_v59 }
 0x1fb   : > { %v905_v43 = vpop.permute.xlu2 %904  ;;  %v1007_v60 = vadd.f32 %v988_v24, %v987_v13  ;;  %v1003_v24 = vmul.f32 %v2833_v56, %v2659_v46 }
 0x1fc   : > { %v990_v16 = vmul.f32 %v905_v43, %v2533_v53 }
 0x1fd   : > { %v1008_v9 = vrot.slane %v1007_v60, 4 }
 0x1fe   : > { %v1014_v21 = vadd.f32 %v990_v16, %v989_v14 }
 0x200   : > { %v930_v19 = vpop.permute.xlu1 %929  ;;  %v915_v35 = vpop.permute.xlu0 %914  ;;  %v1015_v36 = vrot.slane %v1014_v21, 4 }
 0x201   : > { %v995_v4 = vmul.f32 %v930_v19, %v2579_v54  ;;  %v992_v61 = vmul.f32 %v915_v35, %v2524_v37 }
 0x203   : > { %v935_v48 = vpop.permute.xlu2 %934 }
 0x204   : > { %v996_v49 = vmul.f32 %v935_v48, %v2604_v0 }
 0x206   : > { %v1035_v10 = vadd.f32 %v996_v49, %v995_v4 }
 0x208   : > { %v940_v41 = vpop.permute.xlu1 %939  ;;  %v950_v33 = vpop.permute.xlu0 %949  ;;  %v1036_v58 = vrot.slane %v1035_v10, 4 }
 0x209   : > { %v997_v42 = vmul.f32 %v940_v41, %v2590_v26  ;;  %v999_v18 = vmul.f32 %v950_v33, %v2634_v30 }
 0x20a   : > { %v1037_v48 = vadd.f32 %v1036_v58, %v1035_v10 }
 0x20b   : > { %v945_v8 = vpop.permute.xlu2 %944 }
 0x20c   : > { %v998_v1 = vmul.f32 %v945_v8, %v2614_v34 }
 0x20e   : > { %v1042_v25 = vadd.f32 %v998_v1, %v997_v42 }
 0x210   : > { %v910_v55 = vpop.permute.xlu1 %909  ;;  %v965_v7 = vpop.permute.xlu0 %964  ;;  %v1043_v6 = vrot.slane %v1042_v25, 4 }
 0x211   : > { %v991_v44 = vmul.f32 %v910_v55, %v2502_v45  ;;  %v1002_v27 = vmul.f32 %v965_v7, %v2669_v20  ;;  %v1009_v55 = vadd.f32 %v1008_v9, %v1007_v60  ;;  %v1038_v7 = vrot.slane %v1037_v48, 2 }
 0x212   : > { %v1044_v41 = vadd.f32 %v1043_v6, %v1042_v25 }
 0x213   : > { %v920_v29 = vpop.permute.xlu2 %919  ;;  %v1021_v57 = vadd.f32 %v992_v61, %v991_v44  ;;  %v1010_v10 = vrot.slane %v1009_v55, 2 }
 0x214   : > { %v993_v3 = vmul.f32 %v920_v29, %v2570_v31  ;;  %v1016_v29 = vadd.f32 %v1015_v36, %v1014_v21  ;;  %v1045_v14 = vrot.slane %v1044_v41, 2 }
 0x215   : > { %v1022_v8 = vrot.slane %v1021_v57, 4 }
 0x216   : > { %v1017_v25 = vrot.slane %v1016_v29, 2 }
 0x218   : > { %v925_v51 = vpop.permute.xlu1 %924  ;;  %v980_v43 = vpop.permute.xlu0 %979  ;;  %v1018_v9 = vadd.f32 %v1017_v25, %v1016_v29 }
 0x219   : > { %v994_v23 = vmul.f32 %v925_v51, %v2559_v63  ;;  %v1005_v4 = vmul.f32 %v980_v43, %v2685_v12  ;;  %v1023_v51 = vadd.f32 %v1022_v8, %v1021_v57  ;;  %v1011_v57 = vadd.f32 %v1010_v10, %v1009_v55 }
 0x21b   : > { %v955_v22 = vpop.permute.xlu2 %954  ;;  %v1028_v32 = vadd.f32 %v994_v23, %v993_v3  ;;  %v1024_v58 = vrot.slane %v1023_v51, 2 }
 0x21c   : > { %v1000_v39 = vmul.f32 %v955_v22, %v2625_v5 }
 0x21d   : > { %v1029_v50 = vrot.slane %v1028_v32, 4 }
 0x21e   : > { %v1049_v52 = vadd.f32 %v1000_v39, %v999_v18  ;;  %v1039_v39 = vadd.f32 %v1038_v7, %v1037_v48 }
 0x21f   : > { %v1030_v42 = vadd.f32 %v1029_v50, %v1028_v32  ;;  %v1046_v32 = vadd.f32 %v1045_v14, %v1044_v41 }
 0x220   : > { %v960_v17 = vpop.permute.xlu1 %959  ;;  %v1050_v28 = vrot.slane %v1049_v52, 4  ;;  %v1040_v50 = vrot.slane %v1039_v39, 1 }
 0x221   : > { %v1001_v19 = vmul.f32 %v960_v17, %v2645_v62  ;;  %v1031_v22 = vrot.slane %v1030_v42, 2  ;;  %v1047_v43 = vrot.slane %v1046_v32, 1 }
 0x222   : > { %v1051_v1 = vadd.f32 %v1050_v28, %v1049_v52  ;;  %v2856_v7 = vadd.f32 %v1040_v50, %v1039_v39 }
 0x223   : > { %v1056_v33 = vadd.f32 %v1002_v27, %v1001_v19  ;;  %v985_v35 = vpop.permute.xlu2 %984  ;;  %v1032_v17 = vadd.f32 %v1031_v22, %v1030_v42  ;;  %v1025_v19 = vadd.f32 %v1024_v58, %v1023_v51  ;;  %v2858_v55 = vadd.f32 %v1047_v43, %v1046_v32 }
 0x224   : > { %v1006_v49 = vmul.f32 %v985_v35, %v2681_v47  ;;  %v1052_v60 = vrot.slane %v1051_v1, 2  ;;  %v1012_v35 = vrot.slane %v1011_v57, 1 }
 0x225   : > { %v1057_v13 = vrot.slane %v1056_v33, 4  ;;  %v1033_v48 = vrot.slane %v1032_v17, 1  ;;  %3365 = vst [vmem:[#allocation10_spill] sm:$0xff] %v2858_v55  ;;  %v1026_v29 = vrot.slane %v1025_v19, 1 }
 0x226   : > { %v1070_v16 = vadd.f32 %v1006_v49, %v1005_v4  ;;  %v1053_v56 = vadd.f32 %v1052_v60, %v1051_v1  ;;  %v1019_v4 = vrot.slane %v1018_v9, 1 }
 0x227   : > { %v1058_v23 = vadd.f32 %v1057_v13, %v1056_v33  ;;  %v2866_v51 = vadd.f32 %v1033_v48, %v1032_v17 }
 0x228   : > { %v1071_v44 = vrot.slane %v1070_v16, 4  ;;  %v975_v3 = vpop.permute.xlu1 %974  ;;  %v1054_v49 = vrot.slane %v1053_v56, 1  ;;  %v2864_v14 = vadd.f32 %v1019_v4, %v1018_v9 }
 0x229   : > { %v1059_v21 = vrot.slane %v1058_v23, 2  ;;  %v1004_v18 = vmul.f32 %v975_v3, %v2677_v40  ;;  %3369 = vst [vmem:[#allocation14_spill] sm:$0xff] %v2866_v51  ;;  %v2876_v3 = vadd.f32 %v1026_v29, %v1025_v19 }
 0x22a   : > { %v1072_v61 = vadd.f32 %v1071_v44, %v1070_v16  ;;  %v2862_v16 = vadd.f32 %v1012_v35, %v1011_v57  ;;  %3368 = vst [vmem:[#allocation13_spill] sm:$0xff] %v2864_v14  ;;  %v1078_v44 = vmax.f32 %v2864_v14, %v2858_v55 }
 0x22b   : > { %v1060_v52 = vadd.f32 %v1059_v21, %v1058_v23  ;;  %v1063_v6 = vadd.f32 %v1004_v18, %v1003_v24  ;;  %v2868_v23 = vadd.f32 %v1054_v49, %v1053_v56  ;;  %3372 = vst [vmem:[#allocation17_spill] sm:$0xff] %v2876_v3 }
 0x22c   : > { %v1073_v36 = vrot.slane %v1072_v61, 2  ;;  %3367 = vst [vmem:[#allocation12_spill] sm:$0xff] %v2862_v16  ;;  %v1077_v25 = vmax.f32 %v2862_v16, %v2856_v7 }
 0x22d   : > { %v1064_v27 = vrot.slane %v1063_v6, 4  ;;  %v1061_v8 = vrot.slane %v1060_v52, 1  ;;  %3370 = vst [vmem:[#allocation15_spill] sm:$0xff] %v2868_v23  ;;  %v1079_v21 = vmax.f32 %v2876_v3, %v2868_v23 }
 0x22e   : > { %v1074_v28 = vadd.f32 %v1073_v36, %v1072_v61 }
 0x22f   : > { %v1065_v33 = vadd.f32 %v1064_v27, %v1063_v6  ;;  %v2860_v42 = vadd.f32 %v1061_v8, %v1060_v52 }
 0x230   : > { %v1075_v41 = vrot.slane %v1074_v28, 1 }
 0x231   : > { %v1066_v13 = vrot.slane %v1065_v33, 2  ;;  %3366 = vst [vmem:[#allocation11_spill] sm:$0xff] %v2860_v42  ;;  %v1080_v22 = vmax.f32 %v2866_v51, %v2860_v42 }
 0x232   : > { %v2870_v24 = vadd.f32 %v1075_v41, %v1074_v28 }
 0x233   : > { %v1067_v1 = vadd.f32 %v1066_v13, %v1065_v33  ;;  %v1084_v61 = vmax.f32 %v1079_v21, %v1080_v22 }
 0x234   : > { %3371 = vst [vmem:[#allocation16_spill] sm:$0xff] %v2870_v24  ;;  %v1082_v18 = vmax.f32 %v1078_v44, %v2870_v24 }
 0x235   : > { %v1068_v10 = vrot.slane %v1067_v1, 1 }
 0x237   : > { %v2880_v60 = vadd.f32 %v1068_v10, %v1067_v1 }
 0x239   : > { %3373 = vst [vmem:[#allocation18_spill] sm:$0xff] %v2880_v60  ;;  %v1081_v39 = vmax.f32 %v1077_v25, %v2880_v60 }
 0x23b   : > { %v1083_v32 = vmax.f32 %v1081_v39, %v1082_v18 }
 0x23d   : > { %v1085_v58 = vmax.f32 %v1083_v32, %v1084_v61 }
 0x23f   : > { %v1094_v52 = vsub.f32 %v2880_v60, %v1085_v58  ;;  %v1095_v6 = vsub.f32 %v2870_v24, %v1085_v58  ;;  %v1086_v57 = vsub.f32 %v2862_v16, %v1085_v58  ;;  %v1087_v9 = vsub.f32 %v2864_v14, %v1085_v58 }
 0x240   : > { %v1088_v36 = vsub.f32 %v2876_v3, %v1085_v58  ;;  %v1089_v17 = vsub.f32 %v2866_v51, %v1085_v58  ;;  %v1090_v50 = vsub.f32 %v2856_v7, %v1085_v58  ;;  %v1091_v28 = vsub.f32 %v2858_v55, %v1085_v58 }
 0x241   : > { %v1112_v56 = vmul.f32 1.442695, %v1094_v52  ;;  %v1114_v27 = vmul.f32 1.442695, %v1095_v6  ;;  %v1096_v43 = vmul.f32 1.442695, %v1086_v57  ;;  %v1092_v8 = vsub.f32 %v2868_v23, %v1085_v58 }
 0x242   : > { %v1098_v19 = vmul.f32 1.442695, %v1087_v9  ;;  %v1100_v33 = vmul.f32 1.442695, %v1088_v36  ;;  %v1093_v35 = vsub.f32 %v2860_v42, %v1085_v58  ;;  %v1102_v4 = vmul.f32 1.442695, %v1089_v17 }
 0x243   : > { %2185 = vpow2.f32 %v1112_v56  ;;  %v1104_v48 = vmul.f32 1.442695, %v1090_v50  ;;  %v1106_v49 = vmul.f32 1.442695, %v1091_v28  ;;  %v1108_v41 = vmul.f32 1.442695, %v1092_v8 }
 0x244   : > { %2187 = vpow2.f32 %v1114_v27  ;;  %v1110_v13 = vmul.f32 1.442695, %v1093_v35 }
 0x245   : > { %2189 = vpow2.f32 %v1096_v43 }
 0x246   : > { %2191 = vpow2.f32 %v1098_v19 }
 0x247   : > { %2193 = vpow2.f32 %v1100_v33 }
 0x248   : > { %2195 = vpow2.f32 %v1102_v4 }
 0x249   : > { %v2896_v29 = vpop.eup %2185  ;;  %2197 = vpow2.f32 %v1104_v48 }
 0x24a   : > { %v2898_v1 = vpop.eup %2187  ;;  %2199 = vpow2.f32 %v1106_v49 }
 0x24b   : > { %v2190_v10 = vpop.eup %2189  ;;  %2201 = vpow2.f32 %v1108_v41  ;;  %v1140_v18 = vrot.slane %v2898_v1, 7 }
 0x24c   : > { %v2192_v25 = vpop.eup %2191  ;;  %2203 = vpow2.f32 %v1110_v13 }
 0x24d   : > { %v2194_v44 = vpop.eup %2193  ;;  %v1126_v22 = vrot.slane %v2192_v25, 7  ;;  %v1141_v27 = vsel %vm790_vm1, %v1140_v18, %v2896_v29 }
 0x24e   : > { %v2196_v21 = vpop.eup %2195  ;;  %v1128_v39 = vrot.slane %v2194_v44, 6  ;;  %v1145_v33 = vsel %vm1144_vm10, %v1141_v27, 0.0 }
 0x24f   : > { %v2198_v61 = vpop.eup %2197  ;;  %v1127_v32 = vsel %vm790_vm1, %v1126_v22, %v2190_v10  ;;  %v1130_v58 = vrot.slane %v2196_v21, 5 }
 0x250   : > { %v2200_v52 = vpop.eup %2199  ;;  %v1129_v6 = vsel %vm792_vm2, %v1128_v39, %v1127_v32  ;;  %v1132_v57 = vrot.slane %v2198_v61, 4 }
 0x251   : > { %v2202_v9 = vpop.eup %2201  ;;  %v1131_v36 = vsel %vm794_vm3, %v1130_v58, %v1129_v6  ;;  %v1134_v17 = vrot.slane %v2200_v52, 3 }
 0x252   : > { %v2204_v56 = vpop.eup %2203  ;;  %v1133_v50 = vsel %vm796_vm4, %v1132_v57, %v1131_v36  ;;  %v1136_v28 = vrot.slane %v2202_v9, 2 }
 0x253   : > { %v1135_v43 = vsel %vm798_vm5, %v1134_v17, %v1133_v50  ;;  %v1138_v19 = vrot.slane %v2204_v56, 1 }
 0x254   : > { %v1137_v8 = vsel %vm800_vm6, %v1136_v28, %v1135_v43 }
 0x255   : > { %v1139_v35 = vsel %vm802_vm7, %v1138_v19, %v1137_v8 }
 0x256   : > { %v1146_v4 = vadd.f32 %v1145_v33, %v1139_v35 }
 0x258   : > { %v1147_v48 = vrot.slane %v1146_v4, 4 }
 0x25a   : > { %v1148_v49 = vadd.f32 %v1147_v48, %v1146_v4 }
 0x25c   : > { %v1149_v41 = vrot.slane %v1148_v49, 2 }
 0x25e   : > { %v1150_v13 = vadd.f32 %v1149_v41, %v1148_v49 }
 0x260   : > { %v1151_v22 = vrot.slane %v1150_v13, 1 }
 0x262   : > { %v1152_v39 = vadd.f32 %v1151_v22, %v1150_v13 }
 0x264   : > { %2205 = vrcp.f32 %v1152_v39 }
 0x26a   : > { %v2206_v18 = vpop.eup %2205 }
 0x26b   : > { %v1154_v32 = vperm.slane %v2206_v18, 0 }
 0x26d   : > { %v1156_v58 = vmul.f32 %v2192_v25, %v1154_v32  ;;  %v1155_v6 = vmul.f32 %v2190_v10, %v1154_v32  ;;  %v1157_v28 = vmul.f32 %v2194_v44, %v1154_v32  ;;  %v1158_v33 = vmul.f32 %v2196_v21, %v1154_v32 }
 0x26e   : > { %v1159_v25 = vmul.f32 %v2198_v61, %v1154_v32  ;;  %v1160_v49 = vmul.f32 %v2200_v52, %v1154_v32  ;;  %v1161_v22 = vmul.f32 %v2202_v9, %v1154_v32  ;;  %v1162_v39 = vmul.f32 %v2204_v56, %v1154_v32 }
 0x26f   : > { %v1166_v57 = vperm.slane %v1156_v58, 0  ;;  %v1165_v36 = vperm.slane %v1155_v6, 0  ;;  %v1167_v43 = vperm.slane %v1157_v28, 0  ;;  %v1168_v35 = vperm.slane %v1158_v33, 0 }
 0x270   : > { %v1169_v4 = vperm.slane %v1159_v25, 0  ;;  %v1170_v13 = vperm.slane %v1160_v49, 0  ;;  %v1171_v58 = vperm.slane %v1161_v22, 0  ;;  %v1172_v6 = vperm.slane %v1162_v39, 0 }
 0x271   : > { %v1177_v17 = vmul.f32 %v1166_v57, %v2508_v59  ;;  %v1176_v27 = vmul.f32 %v1165_v36, %v2549_v38  ;;  %v1175_v50 = vmul.f32 %v1165_v36, %v2516_v15  ;;  %v1179_v19 = vmul.f32 %v1167_v43, %v2502_v45 }
 0x272   : > { %v1180_v8 = vmul.f32 %v1167_v43, %v2524_v37  ;;  %v1178_v10 = vmul.f32 %v1166_v57, %v2533_v53  ;;  %v1182_v48 = vmul.f32 %v1168_v35, %v2559_v63  ;;  %v1183_v44 = vmul.f32 %v1169_v4, %v2579_v54 }
 0x273   : > { %1199 = vadd.xlane.f32.xlu2 %v1177_v17  ;;  %1197 = vadd.xlane.f32.xlu0 %v1176_v27  ;;  %v1181_v41 = vmul.f32 %v1168_v35, %v2570_v31  ;;  %v1185_v21 = vmul.f32 %v1170_v13, %v2590_v26  ;;  %v1186_v61 = vmul.f32 %v1170_v13, %v2614_v34 }
 0x274   : > { %1195 = vadd.xlane.f32.xlu1 %v1175_v50  ;;  %v1184_v18 = vmul.f32 %v1169_v4, %v2604_v0  ;;  %v1188_v52 = vmul.f32 %v1171_v58, %v2625_v5  ;;  %v1189_v57 = vmul.f32 %v1172_v6, %v2645_v62  ;;  %v1163_v36 = vmul.f32 %v2896_v29, %v1154_v32 }
 0x275   : > { %v1187_v17 = vmul.f32 %v1171_v58, %v2634_v30  ;;  %v1164_v50 = vmul.f32 %v2898_v1, %v1154_v32  ;;  %v1190_v28 = vmul.f32 %v1172_v6, %v2669_v20 }
 0x276   : > { %v1173_v9 = vperm.slane %v1163_v36, 0 }
 0x277   : > { %v1174_v43 = vperm.slane %v1164_v50, 0 }
 0x278   : > { %v1191_v56 = vmul.f32 %v1173_v9, %v2659_v46  ;;  %v1192_v27 = vmul.f32 %v1173_v9, %v2677_v40 }
 0x279   : > { %v1194_v29 = vmul.f32 %v1174_v43, %v2681_v47 }
 0x27b   : > { %1203 = vadd.xlane.f32.xlu2 %v1179_v19  ;;  %1205 = vadd.xlane.f32.xlu0 %v1180_v8  ;;  %v1193_v19 = vmul.f32 %v1174_v43, %v2685_v12 }
 0x27c   : > { %1201 = vadd.xlane.f32.xlu1 %v1178_v10 }
 0x283   : > { %1209 = vadd.xlane.f32.xlu2 %v1182_v48  ;;  %1211 = vadd.xlane.f32.xlu0 %v1183_v44 }
 0x284   : > { %1207 = vadd.xlane.f32.xlu1 %v1181_v41 }
 0x28b   : > { %1215 = vadd.xlane.f32.xlu2 %v1185_v21  ;;  %1217 = vadd.xlane.f32.xlu0 %v1186_v61 }
 0x28c   : > { %1213 = vadd.xlane.f32.xlu1 %v1184_v18 }
 0x293   : > { %1221 = vadd.xlane.f32.xlu2 %v1188_v52  ;;  %1223 = vadd.xlane.f32.xlu0 %v1189_v57 }
 0x294   : > { %1219 = vadd.xlane.f32.xlu1 %v1187_v17 }
 0x29b   : > { %1227 = vadd.xlane.f32.xlu2 %v1191_v56  ;;  %1229 = vadd.xlane.f32.xlu0 %v1192_v27 }
 0x29c   : > { %1225 = vadd.xlane.f32.xlu1 %v1190_v28 }
 0x2a3   : > { %1233 = vadd.xlane.f32.xlu2 %v1194_v29 }
 0x2a4   : > { %1231 = vadd.xlane.f32.xlu1 %v1193_v19 }
 0x2e6   : > { %v2933_v8 = vpop.xlane.xlu2 %1199  ;;  %v2935_v33 = vpop.xlane.xlu0 %1197 }
 0x2e7   : > { %v2937_v25 = vpop.xlane.xlu1 %1195  ;;  %v1237_v21 = vmul.f32 %v2933_v8, %v2933_v8  ;;  %v1236_v61 = vmul.f32 %v2935_v33, %v2935_v33 }
 0x2e8   : > { %v1235_v22 = vmul.f32 %v2937_v25, %v2937_v25 }
 0x2e9   : > { %v1278_v57 = vperm.slane %v1237_v21, %v2710_v2  ;;  %v1276_v17 = vperm.slane %v1236_v61, %v2715_v11 }
 0x2ea   : > { %v1275_v9 = vperm.slane %v1235_v22, %v2710_v2 }
 0x2ee   : > { %v2939_v10 = vpop.xlane.xlu2 %1203  ;;  %v2941_v1 = vpop.xlane.xlu0 %1205 }
 0x2ef   : > { %v2943_v32 = vpop.xlane.xlu1 %1201  ;;  %v1239_v39 = vmul.f32 %v2939_v10, %v2939_v10  ;;  %v1240_v18 = vmul.f32 %v2941_v1, %v2941_v1 }
 0x2f0   : > { %v1238_v41 = vmul.f32 %v2943_v32, %v2943_v32 }
 0x2f1   : > { %v1281_v27 = vperm.slane %v1239_v39, %v2710_v2  ;;  %v1282_v50 = vperm.slane %v1240_v18, %v2715_v11 }
 0x2f2   : > { %v1279_v58 = vperm.slane %v1238_v41, %v2715_v11 }
 0x2f4   : > { %v1280_v28 = vsel %vm761_vm0, %v1279_v58, %v1278_v57  ;;  %v1277_v57 = vsel %vm761_vm0, %v1276_v17, %v1275_v9 }
 0x2f6   : > { %v2945_v35 = vpop.xlane.xlu2 %1209  ;;  %v2947_v4 = vpop.xlane.xlu0 %1211 }
 0x2f7   : > { %v2949_v48 = vpop.xlane.xlu1 %1207  ;;  %v1242_v6 = vmul.f32 %v2945_v35, %v2945_v35  ;;  %v1243_v43 = vmul.f32 %v2947_v4, %v2947_v4 }
 0x2f8   : > { %v1241_v52 = vmul.f32 %v2949_v48, %v2949_v48 }
 0x2f9   : > { %v1285_v41 = vperm.slane %v1242_v6, %v2715_v11  ;;  %v1283_v6 = vsel %vm761_vm0, %v1282_v50, %v1281_v27  ;;  %v1287_v24 = vperm.slane %v1243_v43, %v2710_v2 }
 0x2fa   : > { %v1284_v21 = vperm.slane %v1241_v52, %v2710_v2  ;;  %v1305_v52 = vsel %vm790_vm1, %v1280_v28, %v1277_v57 }
 0x2fb   : > { %v1306_v27 = vsel %vm792_vm2, %v1283_v6, %v1305_v52 }
 0x2fc   : > { %v1286_v3 = vsel %vm761_vm0, %v1285_v41, %v1284_v21 }
 0x2fd   : > { %v1307_v28 = vsel %vm794_vm3, %v1286_v3, %v1306_v27 }
 0x2fe   : > { %v2951_v44 = vpop.xlane.xlu2 %1215  ;;  %v2953_v49 = vpop.xlane.xlu0 %1217 }
 0x2ff   : > { %v2957_v13 = vpop.xlane.xlu1 %1213  ;;  %v1245_v61 = vmul.f32 %v2951_v44, %v2951_v44  ;;  %v1246_v22 = vmul.f32 %v2953_v49, %v2953_v49 }
 0x300   : > { %v1244_v36 = vmul.f32 %v2957_v13, %v2957_v13 }
 0x301   : > { %v1290_v60 = vperm.slane %v1245_v61, %v2710_v2 }
 0x302   : > { %v1288_v39 = vperm.slane %v1244_v36, %v2715_v11  ;;  %v1291_v36 = vperm.slane %v1246_v22, %v2715_v11 }
 0x304   : > { %v1289_v23 = vsel %vm761_vm0, %v1288_v39, %v1287_v24  ;;  %v1292_v24 = vsel %vm761_vm0, %v1291_v36, %v1290_v60 }
 0x305   : > { %v1308_v41 = vsel %vm796_vm4, %v1289_v23, %v1307_v28 }
 0x306   : > { %v2979_v56 = vpop.xlane.xlu2 %1221  ;;  %v2986_v29 = vpop.xlane.xlu0 %1223 }
 0x307   : > { %v2988_v19 = vpop.xlane.xlu1 %1219  ;;  %v1248_v18 = vmul.f32 %v2979_v56, %v2979_v56  ;;  %v1249_v17 = vmul.f32 %v2986_v29, %v2986_v29 }
 0x308   : > { %v1247_v58 = vmul.f32 %v2988_v19, %v2988_v19 }
 0x309   : > { %v1294_v51 = vperm.slane %v1248_v18, %v2715_v11  ;;  %v1296_v22 = vperm.slane %v1249_v17, %v2710_v2  ;;  %v1309_v18 = vsel %vm798_vm5, %v1292_v24, %v1308_v41 }
 0x30a   : > { %v1293_v14 = vperm.slane %v1247_v58, %v2710_v2 }
 0x30c   : > { %v1295_v61 = vsel %vm761_vm0, %v1294_v51, %v1293_v14 }
 0x30d   : > { %v1310_v23 = vsel %vm800_vm6, %v1295_v61, %v1309_v18 }
 0x30e   : > { %v3013_v9 = vpop.xlane.xlu2 %1227  ;;  %v3023_v21 = vpop.xlane.xlu0 %1229 }
 0x30f   : > { %v3016_v50 = vpop.xlane.xlu1 %1225  ;;  %v1251_v3 = vmul.f32 %v3013_v9, %v3013_v9  ;;  %v1252_v58 = vmul.f32 %v3023_v21, %v3023_v21 }
 0x310   : > { %v1250_v43 = vmul.f32 %v3016_v50, %v3016_v50 }
 0x311   : > { %v1299_v36 = vperm.slane %v1251_v3, %v2710_v2  ;;  %v1300_v17 = vperm.slane %v1252_v58, %v2715_v11 }
 0x312   : > { %v1297_v39 = vperm.slane %v1250_v43, %v2715_v11 }
 0x313   : > { %v1301_v24 = vsel %vm761_vm0, %v1300_v17, %v1299_v36 }
 0x314   : > { %v1298_v60 = vsel %vm761_vm0, %v1297_v39, %v1296_v22 }
 0x315   : > { %v1311_v57 = vsel %vm802_vm7, %v1298_v60, %v1310_v23 }
 0x316   : > { %v3036_v6 = vpop.xlane.xlu2 %1233  ;;  %v1315_v14 = vsel %vm807_vm8, %v1311_v57, 0.0 }
 0x317   : > { %v1254_v51 = vmul.f32 %v3036_v6, %v3036_v6  ;;  %1316 = vadd.xlane.f32.xlu0 %v1315_v14  ;;  %v3041_v52 = vpop.xlane.xlu1 %1231 }
 0x318   : > { %v1253_v27 = vmul.f32 %v3041_v52, %v3041_v52 }
 0x319   : > { %v1303_v28 = vperm.slane %v1254_v51, %v2715_v11 }
 0x31a   : > { %v1302_v43 = vperm.slane %v1253_v27, %v2710_v2 }
 0x31c   : > { %v1304_v41 = vsel %vm761_vm0, %v1303_v28, %v1302_v43 }
 0x31d   : > { %v1312_v61 = vsel %vm790_vm1, %v1304_v41, %v1301_v24 }
 0x31e   : > { %v1318_v22 = vsel %vm3359_vm9, %v1312_v61, 0.0 }
 0x31f   : > { %1319 = vadd.xlane.f32.xlu1 %v1318_v22 }
 0x38a   : > { %v1317_v39 = vpop.xlane.xlu0 %1316 }
 0x38b   : > { %v1327_v18 = vadd.f32 1e-09, %v1317_v39  ;;  %v1321_v3 = vadd.f32 1.0, %v1317_v39 }
 0x38d   : > { %2207 = vrsqrt.f32 %v1327_v18  ;;  %vm1335_vm12 = vweird.f32 %v1327_v18 }
 0x38e   : > { %2209 = vrcp.f32 %v1321_v3 }
 0x392   : > { %v1320_v58 = vpop.xlane.xlu1 %1319 }
 0x393   : > { %v1328_v60 = vadd.f32 1e-09, %v1320_v58  ;;  %v2208_v23 = vpop.eup %2207  ;;  %v1322_v36 = vadd.f32 1.0, %v1320_v58 }
 0x394   : > { %v1330_v57 = vmul.f32 %v2208_v23, %v1327_v18  ;;  %v2210_v17 = vpop.eup %2209  ;;  %vm1336_vm11 = vweird.f32 %v2208_v23 }
 0x395   : > { %2211 = vrsqrt.f32 %v1328_v60  ;;  %v1325_v41 = vmul.f32 %v2210_v17, %v1317_v39  ;;  %vm1337_vm13 = vmor %vm1335_vm12, %vm1336_vm11  ;;  %vm1345_vm15 = vweird.f32 %v1328_v60 }
 0x396   : > { %v1331_v14 = vmul.f32 %v2208_v23, %v1330_v57  ;;  %2213 = vrcp.f32 %v1322_v36 }
 0x398   : > { %v1332_v51 = vmul.f32 0.5, %v1331_v14 }
 0x39a   : > { %v1333_v27 = vsub.f32 1.5, %v1332_v51 }
 0x39b   : > { %v2212_v28 = vpop.eup %2211 }
 0x39c   : > { %v1334_v43 = vmul.f32 %v2208_v23, %v1333_v27  ;;  %v1340_v24 = vmul.f32 %v2212_v28, %v1328_v60  ;;  %v2214_v42 = vpop.eup %2213  ;;  %vm1346_vm14 = vweird.f32 %v2212_v28 }
 0x39d   : > { %v1326_v18 = vmul.f32 %v2214_v42, %v1320_v58  ;;  %vm1347_vm9 = vmor %vm1345_vm15, %vm1346_vm14 }
 0x39e   : > { %v1338_v61 = vsel %vm1337_vm13, %v2208_v23, %v1334_v43  ;;  %v1341_v22 = vmul.f32 %v2212_v28, %v1340_v24 }
 0x39f   : > { %v1349_v2 = vmul.f32 %v1338_v61, %v1325_v41 }
 0x3a0   : > { %v1342_v11 = vmul.f32 0.5, %v1341_v22 }
 0x3a1   : > { %v1353_v3 = vperm.slane %v1349_v2, 0  ;;  %v1354_v16 = vperm.slane %v1349_v2, 1  ;;  %v1355_v36 = vperm.slane %v1349_v2, 2  ;;  %v1358_v60 = vperm.slane %v1349_v2, 5 }
 0x3a2   : > { %v1343_v57 = vsub.f32 1.5, %v1342_v11 }
 0x3a3   : > { %v1374_v14 = vmul.f32 %v1353_v3, %v2935_v33  ;;  %v1375_v51 = vmul.f32 %v1354_v16, %v2933_v8  ;;  %v1376_v27 = vmul.f32 %v1354_v16, %v2943_v32  ;;  %v1378_v43 = vmul.f32 %v1355_v36, %v2941_v1 }
 0x3a4   : > { %v1344_v55 = vmul.f32 %v2212_v28, %v1343_v57  ;;  %v1356_v8 = vperm.slane %v1349_v2, 3  ;;  %v1357_v33 = vperm.slane %v1349_v2, 4  ;;  %v1384_v1 = vmul.f32 %v1358_v60, %v2953_v49 }
 0x3a5   : > { %1400 = vperm.xlu0 %2176, %v1374_v14   ;;  %1405 = vperm.xlu1 %2175, %v1375_v51   ;;  %v1377_v32 = vmul.f32 %v1355_v36, %v2939_v10  ;;  %v1383_v10 = vmul.f32 %v1358_v60, %v2951_v44 }
 0x3a6   : > { %v1348_v39 = vsel %vm1347_vm9, %v2212_v28, %v1344_v55  ;;  %v1379_v42 = vmul.f32 %v1356_v8, %v2949_v48  ;;  %v1381_v58 = vmul.f32 %v1357_v33, %v2947_v4  ;;  %v1373_v55 = vmul.f32 %v1353_v3, %v2937_v25 }
 0x3a7   : > { %v1350_v23 = vmul.f32 %v1348_v39, %v1326_v18  ;;  %v1382_v16 = vmul.f32 %v1357_v33, %v2957_v13  ;;  %v1360_v28 = vperm.slane %v1349_v2, 7  ;;  %v1380_v25 = vmul.f32 %v1356_v8, %v2945_v35 }
 0x3a8   : > { %vm3385_vm9 = vcmask 123904  }
 0x3a9   : > { %v1361_v17 = vperm.slane %v1350_v23, 0  ;;  %v1387_v4 = vmul.f32 %v1360_v28, %v2986_v29  ;;  %v1388_v13 = vmul.f32 %v1360_v28, %v3016_v50  ;;  %v1362_v24 = vperm.slane %v1350_v23, 1 }
 0x3ab   : > { %v1389_v11 = vmul.f32 %v1361_v17, %v3013_v9  ;;  %v1359_v9 = vperm.slane %v1349_v2, 6  ;;  %v1390_v49 = vmul.f32 %v1361_v17, %v3023_v21  ;;  %v1391_v2 = vmul.f32 %v1362_v24, %v3041_v52 }
 0x3ac   : > { %v1392_v35 = vmul.f32 %v1362_v24, %v3036_v6 }
 0x3ad   : > { %1410 = vperm.xlu0 %2176, %v1376_v27   ;;  %1420 = vperm.xlu1 %2175, %v1378_v43   ;;  %v1385_v48 = vmul.f32 %v1359_v9, %v2988_v19  ;;  %v1386_v19 = vmul.f32 %v1359_v9, %v2979_v56 }
 0x3ae   : > { %1475 = vperm.xlu2 %2174, %v1389_v11  }
 0x3b5   : > { %1425 = vperm.xlu0 %2176, %v1379_v42   ;;  %1435 = vperm.xlu1 %2175, %v1381_v58  }
 0x3b6   : > { %1395 = vperm.xlu2 %2174, %v1373_v55  }
 0x3bd   : > { %1440 = vperm.xlu0 %2176, %v1382_v16   ;;  %1450 = vperm.xlu1 %2175, %v1384_v1  }
 0x3be   : > { %1415 = vperm.xlu2 %2174, %v1377_v32  }
 0x3c5   : > { %1455 = vperm.xlu0 %2176, %v1385_v48   ;;  %1465 = vperm.xlu1 %2175, %v1387_v4  }
 0x3c6   : > { %1430 = vperm.xlu2 %2174, %v1380_v25  }
 0x3cd   : > { %1470 = vperm.xlu0 %2176, %v1388_v13   ;;  %1480 = vperm.xlu1 %2175, %v1390_v49  }
 0x3ce   : > { %1445 = vperm.xlu2 %2174, %v1383_v10  }
 0x3d5   : > { %1485 = vperm.xlu0 %2176, %v1391_v2  }
 0x3d6   : > { %1460 = vperm.xlu2 %2174, %v1386_v19  }
 0x3de   : > { %1490 = vperm.xlu2 %2174, %v1392_v35  }
 0x408   : > { %v1476_v29 = vpop.permute.xlu2 %1475 }
 0x410   : > { %v1396_v41 = vpop.permute.xlu2 %1395 }
 0x411   : > { %v1493_v43 = vmul.f32 %v1396_v41, %v2516_v15  ;;  %v1509_v41 = vmul.f32 %v1476_v29, %v2659_v46 }
 0x417   : > { %v1401_v50 = vpop.permute.xlu0 %1400  ;;  %v1406_v61 = vpop.permute.xlu1 %1405 }
 0x418   : > { %v1416_v21 = vpop.permute.xlu2 %1415  ;;  %v1494_v6 = vmul.f32 %v1401_v50, %v2549_v38  ;;  %v1495_v8 = vmul.f32 %v1406_v61, %v2508_v59 }
 0x419   : > { %v1497_v28 = vmul.f32 %v1416_v21, %v2502_v45 }
 0x41a   : > { %v1513_v9 = vadd.f32 %v1494_v6, %v1493_v43 }
 0x41c   : > { %v1514_v24 = vrot.slane %v1513_v9, 4 }
 0x41f   : > { %v1411_v22 = vpop.permute.xlu0 %1410  ;;  %v1421_v44 = vpop.permute.xlu1 %1420 }
 0x420   : > { %v1431_v3 = vpop.permute.xlu2 %1430  ;;  %v1496_v23 = vmul.f32 %v1411_v22, %v2533_v53  ;;  %v1498_v42 = vmul.f32 %v1421_v44, %v2524_v37 }
 0x421   : > { %v1500_v33 = vmul.f32 %v1431_v3, %v2559_v63 }
 0x422   : > { %v1520_v48 = vadd.f32 %v1496_v23, %v1495_v8  ;;  %v1527_v13 = vadd.f32 %v1498_v42, %v1497_v28 }
 0x424   : > { %v1521_v2 = vrot.slane %v1520_v48, 4  ;;  %v1528_v50 = vrot.slane %v1527_v13, 4 }
 0x426   : > { %v1529_v23 = vadd.f32 %v1528_v50, %v1527_v13 }
 0x427   : > { %v1426_v57 = vpop.permute.xlu0 %1425  ;;  %v1436_v14 = vpop.permute.xlu1 %1435 }
 0x428   : > { %v1446_v51 = vpop.permute.xlu2 %1445  ;;  %v1499_v36 = vmul.f32 %v1426_v57, %v2570_v31  ;;  %v1501_v17 = vmul.f32 %v1436_v14, %v2579_v54 }
 0x429   : > { %v1503_v11 = vmul.f32 %v1446_v51, %v2590_v26  ;;  %v1515_v51 = vadd.f32 %v1514_v24, %v1513_v9 }
 0x42a   : > { %v1534_v4 = vadd.f32 %v1500_v33, %v1499_v36 }
 0x42c   : > { %v1535_v19 = vrot.slane %v1534_v4, 4 }
 0x42f   : > { %v1441_v18 = vpop.permute.xlu0 %1440  ;;  %v1451_v52 = vpop.permute.xlu1 %1450 }
 0x430   : > { %v1502_v56 = vmul.f32 %v1441_v18, %v2604_v0  ;;  %v1504_v39 = vmul.f32 %v1451_v52, %v2614_v34  ;;  %v1461_v27 = vpop.permute.xlu2 %1460  ;;  %v1522_v18 = vadd.f32 %v1521_v2, %v1520_v48  ;;  %v1536_v52 = vadd.f32 %v1535_v19, %v1534_v4 }
 0x431   : > { %v1506_v16 = vmul.f32 %v1461_v27, %v2625_v5 }
 0x432   : > { %v1541_v58 = vadd.f32 %v1502_v56, %v1501_v17  ;;  %v1548_v1 = vadd.f32 %v1504_v39, %v1503_v11  ;;  %v1516_v11 = vrot.slane %v1515_v51, 2  ;;  %v1523_v8 = vrot.slane %v1522_v18, 2 }
 0x433   : > { %v1537_v33 = vrot.slane %v1536_v52, 2 }
 0x434   : > { %v1542_v49 = vrot.slane %v1541_v58, 4  ;;  %v1549_v10 = vrot.slane %v1548_v1, 4  ;;  %v1524_v13 = vadd.f32 %v1523_v8, %v1522_v18 }
 0x436   : > { %v1543_v61 = vadd.f32 %v1542_v49, %v1541_v58  ;;  %v1550_v3 = vadd.f32 %v1549_v10, %v1548_v1  ;;  %v1538_v49 = vadd.f32 %v1537_v33, %v1536_v52  ;;  %v3374_v33 = vld [vmem:[#allocation10_spill] sm:$0xff] }
 0x437   : > { %v1456_v55 = vpop.permute.xlu0 %1455  ;;  %v1466_v60 = vpop.permute.xlu1 %1465 }
 0x438   : > { %v1505_v32 = vmul.f32 %v1456_v55, %v2634_v30  ;;  %v1507_v57 = vmul.f32 %v1466_v60, %v2645_v62  ;;  %v1544_v36 = vrot.slane %v1543_v61, 2  ;;  %v1551_v29 = vrot.slane %v1550_v3, 2  ;;  %v1491_v17 = vpop.permute.xlu2 %1490 }
 0x439   : > { %v1530_v60 = vrot.slane %v1529_v23, 2  ;;  %v1512_v1 = vmul.f32 %v1491_v17, %v2681_v47 }
 0x43a   : > { %v1555_v25 = vadd.f32 %v1506_v16, %v1505_v32  ;;  %v1545_v16 = vadd.f32 %v1544_v36, %v1543_v61  ;;  %v1552_v9 = vadd.f32 %v1551_v29, %v1550_v3 }
 0x43c   : > { %v1556_v35 = vrot.slane %v1555_v25, 4  ;;  %v1553_v50 = vrot.slane %v1552_v9, 1 }
 0x43e   : > { %v1557_v56 = vadd.f32 %v1556_v35, %v1555_v25  ;;  %v1517_v25 = vadd.f32 %v1516_v11, %v1515_v51  ;;  %v1531_v35 = vadd.f32 %v1530_v60, %v1529_v23  ;;  %v1554_v51 = vadd.f32 %v1553_v50, %v1552_v9 }
 0x43f   : > { %v1471_v22 = vpop.permute.xlu0 %1470  ;;  %v1481_v44 = vpop.permute.xlu1 %1480 }
 0x440   : > { %v1508_v21 = vmul.f32 %v1471_v22, %v2669_v20  ;;  %v1510_v14 = vmul.f32 %v1481_v44, %v2677_v40  ;;  %v1558_v42 = vrot.slane %v1557_v56, 2  ;;  %v1518_v44 = vrot.slane %v1517_v25, 1 }
 0x442   : > { %v1562_v39 = vadd.f32 %v1508_v21, %v1507_v57  ;;  %v1569_v6 = vadd.f32 %v1510_v14, %v1509_v41  ;;  %v1559_v10 = vadd.f32 %v1558_v42, %v1557_v56  ;;  %v1546_v41 = vrot.slane %v1545_v16, 1 }
 0x443   : > { %v1525_v57 = vrot.slane %v1524_v13, 1  ;;  %v1539_v21 = vrot.slane %v1538_v49, 1  ;;  %v1519_v56 = vadd.f32 %v1518_v44, %v1517_v25  ;;  %v1588_v42 = vadd.f32 %v1554_v51, %v3374_v33 }
 0x444   : > { %v1563_v27 = vrot.slane %v1562_v39, 4  ;;  %v1570_v43 = vrot.slane %v1569_v6, 4  ;;  %v1560_v3 = vrot.slane %v1559_v10, 1  ;;  %v1547_v36 = vadd.f32 %v1546_v41, %v1545_v16  ;;  %v3377_v16 = vld [vmem:[#allocation13_spill] sm:$0xff]  ;;  %v3382_v41 = vld [vmem:[#allocation16_spill] sm:$0xff] }
 0x445   : > { %v1526_v29 = vadd.f32 %v1525_v57, %v1524_v13  ;;  %v1540_v17 = vadd.f32 %v1539_v21, %v1538_v49  ;;  %v3380_v13 = vld [vmem:[#allocation18_spill] sm:$0xff] }
 0x446   : > { %v1564_v58 = vadd.f32 %v1563_v27, %v1562_v39  ;;  %v1571_v55 = vadd.f32 %v1570_v43, %v1569_v6  ;;  %v1532_v6 = vrot.slane %v1531_v35, 1  ;;  %v1561_v27 = vadd.f32 %v1560_v3, %v1559_v10 }
 0x447   : > { %v1486_v32 = vpop.permute.xlu0 %1485  ;;  %v1587_v8 = vadd.f32 %v1547_v36, %v2856_v7  ;;  %v1584_v9 = vadd.f32 %v1526_v29, %v3377_v16 }
 0x448   : > { %v1565_v28 = vrot.slane %v1564_v58, 2  ;;  %v1572_v48 = vrot.slane %v1571_v55, 2  ;;  %v1511_v4 = vmul.f32 %v1486_v32, %v2685_v12  ;;  %v1533_v11 = vadd.f32 %v1532_v6, %v1531_v35 }
 0x449   : > { %v1594_v7 = vmax.f32 %v1584_v9, %v1588_v42 }
 0x44a   : > { %v1566_v24 = vadd.f32 %v1565_v28, %v1564_v58  ;;  %v1573_v2 = vadd.f32 %v1572_v48, %v1571_v55  ;;  %v1576_v19 = vadd.f32 %v1512_v1, %v1511_v4  ;;  %v3375_v58 = vld [vmem:[#allocation11_spill] sm:$0xff]  ;;  %v3376_v1 = vld [vmem:[#allocation12_spill] sm:$0xff]  ;;  %v3378_v28 = vld [vmem:[#allocation14_spill] sm:$0xff] }
 0x44b   : > { %v1583_v32 = vadd.f32 %v1519_v56, %v3376_v1  ;;  %v1586_v48 = vadd.f32 %v1540_v17, %v3378_v28  ;;  %v3379_v4 = vld [vmem:[#allocation15_spill] sm:$0xff] }
 0x44c   : > { %v1567_v22 = vrot.slane %v1566_v24, 1  ;;  %v1577_v61 = vrot.slane %v1576_v19, 4  ;;  %v1574_v14 = vrot.slane %v1573_v2, 1  ;;  %v1589_v25 = vadd.f32 %v1561_v27, %v3379_v4 }
 0x44e   : > { %v1578_v39 = vadd.f32 %v1577_v61, %v1576_v19  ;;  %v1568_v18 = vadd.f32 %v1567_v22, %v1566_v24  ;;  %v1575_v23 = vadd.f32 %v1574_v14, %v1573_v2  ;;  %v3381_v24 = vld [vmem:[#allocation17_spill] sm:$0xff]  ;;  %v1593_v19 = vmax.f32 %v1583_v32, %v1587_v8 }
 0x44f   : > { %v1585_v2 = vadd.f32 %v1533_v11, %v3381_v24 }
 0x450   : > { %v1579_v52 = vrot.slane %v1578_v39, 2  ;;  %v1590_v55 = vadd.f32 %v1568_v18, %v3375_v58  ;;  %v1591_v49 = vadd.f32 %v1575_v23, %v3380_v13 }
 0x451   : > { %v1595_v22 = vmax.f32 %v1585_v2, %v1589_v25 }
 0x452   : > { %v1580_v43 = vadd.f32 %v1579_v52, %v1578_v39  ;;  %v1596_v35 = vmax.f32 %v1586_v48, %v1590_v55  ;;  %v1597_v61 = vmax.f32 %v1593_v19, %v1591_v49 }
 0x454   : > { %v1581_v60 = vrot.slane %v1580_v43, 1  ;;  %v1600_v57 = vmax.f32 %v1595_v22, %v1596_v35 }
 0x456   : > { %v1582_v10 = vadd.f32 %v1581_v60, %v1580_v43 }
 0x458   : > { %v1592_v50 = vadd.f32 %v1582_v10, %v3382_v41 }
 0x45a   : > { %v1598_v44 = vmax.f32 %v1594_v7, %v1592_v50 }
 0x45c   : > { %v1599_v21 = vmax.f32 %v1597_v61, %v1598_v44 }
 0x45e   : > { %v1601_v3 = vmax.f32 %v1599_v21, %v1600_v57 }
 0x460   : > { %v1610_v14 = vsub.f32 %v1591_v49, %v1601_v3  ;;  %v1611_v39 = vsub.f32 %v1592_v50, %v1601_v3  ;;  %v1602_v6 = vsub.f32 %v1583_v32, %v1601_v3  ;;  %v1603_v36 = vsub.f32 %v1584_v9, %v1601_v3 }
 0x461   : > { %v1604_v51 = vsub.f32 %v1585_v2, %v1601_v3  ;;  %v1605_v18 = vsub.f32 %v1586_v48, %v1601_v3  ;;  %v1606_v29 = vsub.f32 %v1587_v8, %v1601_v3  ;;  %v1607_v17 = vsub.f32 %v1588_v42, %v1601_v3 }
 0x462   : > { %v1628_v52 = vmul.f32 1.442695, %v1610_v14  ;;  %v1630_v56 = vmul.f32 1.442695, %v1611_v39  ;;  %v1612_v27 = vmul.f32 1.442695, %v1602_v6  ;;  %v1608_v43 = vsub.f32 %v1589_v25, %v1601_v3 }
 0x463   : > { %v1614_v23 = vmul.f32 1.442695, %v1603_v36  ;;  %v1616_v11 = vmul.f32 1.442695, %v1604_v51  ;;  %v1609_v33 = vsub.f32 %v1590_v55, %v1601_v3  ;;  %v1618_v58 = vmul.f32 1.442695, %v1605_v18 }
 0x464   : > { %2215 = vpow2.f32 %v1628_v52  ;;  %v1620_v60 = vmul.f32 1.442695, %v1606_v29  ;;  %v1622_v1 = vmul.f32 1.442695, %v1607_v17  ;;  %v1624_v32 = vmul.f32 1.442695, %v1608_v43 }
 0x465   : > { %2217 = vpow2.f32 %v1630_v56  ;;  %v1626_v16 = vmul.f32 1.442695, %v1609_v33 }
 0x466   : > { %2219 = vpow2.f32 %v1612_v27 }
 0x467   : > { %2221 = vpow2.f32 %v1614_v23 }
 0x468   : > { %2223 = vpow2.f32 %v1616_v11 }
 0x469   : > { %2225 = vpow2.f32 %v1618_v58 }
 0x46a   : > { %v3103_v9 = vpop.eup %2215  ;;  %2227 = vpow2.f32 %v1620_v60 }
 0x46b   : > { %v3105_v8 = vpop.eup %2217  ;;  %2229 = vpow2.f32 %v1622_v1 }
 0x46c   : > { %v2220_v42 = vpop.eup %2219  ;;  %2231 = vpow2.f32 %v1624_v32  ;;  %v1656_v25 = vrot.slane %v3105_v8, 7 }
 0x46d   : > { %v2222_v28 = vpop.eup %2221  ;;  %2233 = vpow2.f32 %v1626_v16 }
 0x46e   : > { %v2224_v55 = vpop.eup %2223  ;;  %v1642_v48 = vrot.slane %v2222_v28, 7  ;;  %v1657_v61 = vsel %vm790_vm1, %v1656_v25, %v3103_v9 }
 0x46f   : > { %v2226_v4 = vpop.eup %2225  ;;  %v1644_v13 = vrot.slane %v2224_v55, 6  ;;  %v1660_v39 = vsel %vm1144_vm10, %v1657_v61, 0.0 }
 0x470   : > { %v2228_v49 = vpop.eup %2227  ;;  %v1643_v10 = vsel %vm790_vm1, %v1642_v48, %v2220_v42  ;;  %v1646_v24 = vrot.slane %v2226_v4, 5 }
 0x471   : > { %v2230_v2 = vpop.eup %2229  ;;  %v1645_v19 = vsel %vm792_vm2, %v1644_v13, %v1643_v10  ;;  %v1648_v7 = vrot.slane %v2228_v49, 4 }
 0x472   : > { %v2232_v35 = vpop.eup %2231  ;;  %v1647_v41 = vsel %vm794_vm3, %v1646_v24, %v1645_v19  ;;  %v1650_v50 = vrot.slane %v2230_v2, 3 }
 0x473   : > { %v2234_v22 = vpop.eup %2233  ;;  %v1649_v44 = vsel %vm796_vm4, %v1648_v7, %v1647_v41  ;;  %v1652_v57 = vrot.slane %v2232_v35, 2 }
 0x474   : > { %v1651_v21 = vsel %vm798_vm5, %v1650_v50, %v1649_v44  ;;  %v1654_v3 = vrot.slane %v2234_v22, 1 }
 0x475   : > { %v1653_v14 = vsel %vm800_vm6, %v1652_v57, %v1651_v21 }
 0x476   : > { %v1655_v6 = vsel %vm802_vm7, %v1654_v3, %v1653_v14 }
 0x477   : > { %v1661_v36 = vadd.f32 %v1660_v39, %v1655_v6 }
 0x479   : > { %v1662_v51 = vrot.slane %v1661_v36, 4 }
 0x47b   : > { %v1663_v18 = vadd.f32 %v1662_v51, %v1661_v36 }
 0x47d   : > { %v1664_v52 = vrot.slane %v1663_v18, 2 }
 0x47f   : > { %v1665_v56 = vadd.f32 %v1664_v52, %v1663_v18  ;;  %v3383_v52 = vld [vmem:[#allocation9_spill] sm:$0xff] }
 0x481   : > { %v1666_v29 = vrot.slane %v1665_v56, 1 }
 0x483   : > { %v1667_v17 = vadd.f32 %v1666_v29, %v1665_v56 }
 0x485   : > { %2235 = vrcp.f32 %v1667_v17 }
 0x48b   : > { %v2236_v27 = vpop.eup %2235 }
 0x48c   : > { %v1669_v23 = vperm.slane %v2236_v27, 0  ;;  %v3384_v27 = vld [vmem:[#allocation8_spill] sm:$0xff] }
 0x48e   : > { %v1671_v43 = vmul.f32 %v2222_v28, %v1669_v23  ;;  %v1670_v11 = vmul.f32 %v2220_v42, %v1669_v23  ;;  %v1672_v16 = vmul.f32 %v2224_v55, %v1669_v23  ;;  %v1674_v10 = vmul.f32 %v2228_v49, %v1669_v23 }
 0x48f   : > { %v1673_v28 = vmul.f32 %v2226_v4, %v1669_v23  ;;  %v1675_v24 = vmul.f32 %v2230_v2, %v1669_v23  ;;  %v1677_v4 = vmul.f32 %v2234_v22, %v1669_v23  ;;  %v1676_v49 = vmul.f32 %v2232_v35, %v1669_v23 }
 0x490   : > { %v1681_v33 = vperm.slane %v1671_v43, 0  ;;  %v1680_v58 = vperm.slane %v1670_v11, 0  ;;  %v1682_v48 = vperm.slane %v1672_v16, 0  ;;  %v1678_v41 = vmul.f32 %v3103_v9, %v1669_v23 }
 0x491   : > { %v1679_v35 = vmul.f32 %v3105_v8, %v1669_v23 }
 0x492   : > { %v1692_v60 = vmul.f32 %v1681_v33, %v2508_v59  ;;  %v1691_v1 = vmul.f32 %v1680_v58, %v2549_v38  ;;  %v1690_v32 = vmul.f32 %v1680_v58, %v2516_v15  ;;  %v1695_v25 = vmul.f32 %v1682_v48, %v2524_v37 }
 0x493   : > { %v1694_v13 = vmul.f32 %v1682_v48, %v2502_v45  ;;  %v1693_v42 = vmul.f32 %v1681_v33, %v2533_v53  ;;  %v1684_v59 = vperm.slane %v1674_v10, 0  ;;  %v1683_v38 = vperm.slane %v1673_v28, 0 }
 0x494   : > { %1714 = vadd.xlane.f32.xlu2 %v1692_v60  ;;  %1712 = vadd.xlane.f32.xlu0 %v1691_v1  ;;  %v1685_v45 = vperm.slane %v1675_v24, 0 }
 0x495   : > { %1710 = vadd.xlane.f32.xlu1 %v1690_v32  ;;  %v1698_v15 = vmul.f32 %v1684_v59, %v2579_v54  ;;  %v1697_v55 = vmul.f32 %v1683_v38, %v2559_v63  ;;  %v1696_v19 = vmul.f32 %v1683_v38, %v2570_v31  ;;  %v1699_v7 = vmul.f32 %v1684_v59, %v2604_v0 }
 0x496   : > { %v1701_v37 = vmul.f32 %v1685_v45, %v2614_v34  ;;  %v1700_v53 = vmul.f32 %v1685_v45, %v2590_v26  ;;  %v1687_v54 = vperm.slane %v1677_v4, 0  ;;  %v1686_v63 = vperm.slane %v1676_v49, 0 }
 0x497   : > { %v1688_v26 = vperm.slane %v1678_v41, 0 }
 0x498   : > { %v1704_v2 = vmul.f32 %v1687_v54, %v2645_v62  ;;  %v1703_v31 = vmul.f32 %v1686_v63, %v2625_v5  ;;  %v1702_v50 = vmul.f32 %v1686_v63, %v2634_v30  ;;  %v1705_v22 = vmul.f32 %v1687_v54, %v2669_v20 }
 0x499   : > { %v1707_v34 = vmul.f32 %v1688_v26, %v2677_v40  ;;  %v1706_v0 = vmul.f32 %v1688_v26, %v2659_v46  ;;  %v1689_v5 = vperm.slane %v1679_v35, 0 }
 0x49b   : > { %v1709_v62 = vmul.f32 %v1689_v5, %v2681_v47  ;;  %v1708_v30 = vmul.f32 %v1689_v5, %v2685_v12 }
 0x49c   : > { %1720 = vadd.xlane.f32.xlu2 %v1695_v25  ;;  %1718 = vadd.xlane.f32.xlu0 %v1694_v13 }
 0x49d   : > { %1716 = vadd.xlane.f32.xlu1 %v1693_v42 }
 0x4a4   : > { %1726 = vadd.xlane.f32.xlu2 %v1698_v15  ;;  %1724 = vadd.xlane.f32.xlu0 %v1697_v55 }
 0x4a5   : > { %1722 = vadd.xlane.f32.xlu1 %v1696_v19 }
 0x4ac   : > { %1732 = vadd.xlane.f32.xlu2 %v1701_v37  ;;  %1730 = vadd.xlane.f32.xlu0 %v1700_v53 }
 0x4ad   : > { %1728 = vadd.xlane.f32.xlu1 %v1699_v7 }
 0x4b4   : > { %1738 = vadd.xlane.f32.xlu2 %v1704_v2  ;;  %1736 = vadd.xlane.f32.xlu0 %v1703_v31 }
 0x4b5   : > { %1734 = vadd.xlane.f32.xlu1 %v1702_v50 }
 0x4bc   : > { %1744 = vadd.xlane.f32.xlu2 %v1707_v34  ;;  %1742 = vadd.xlane.f32.xlu0 %v1706_v0 }
 0x4bd   : > { %1740 = vadd.xlane.f32.xlu1 %v1705_v22 }
 0x4c4   : > { %1748 = vadd.xlane.f32.xlu0 %v1709_v62 }
 0x4c5   : > { %1746 = vadd.xlane.f32.xlu1 %v1708_v30 }
 0x507   : > { %v3140_v9 = vpop.xlane.xlu2 %1714  ;;  %v3142_v61 = vpop.xlane.xlu0 %1712 }
 0x508   : > { %v3144_v40 = vpop.xlane.xlu1 %1710  ;;  %v1752_v39 = vmul.f32 %v3140_v9, %v3140_v9  ;;  %v1751_v6 = vmul.f32 %v3142_v61, %v3142_v61 }
 0x509   : > { %v1750_v36 = vmul.f32 %v3144_v40, %v3144_v40 }
 0x50a   : > { %v1793_v23 = vperm.slane %v1752_v39, %v3384_v27  ;;  %v1791_v11 = vperm.slane %v1751_v6, %v3383_v52 }
 0x50b   : > { %v1790_v33 = vperm.slane %v1750_v36, %v3384_v27 }
 0x50d   : > { %v1792_v55 = vsel %vm761_vm0, %v1791_v11, %v1790_v33 }
 0x50f   : > { %v3146_v46 = vpop.xlane.xlu2 %1720  ;;  %v3148_v8 = vpop.xlane.xlu0 %1718 }
 0x510   : > { %v3150_v20 = vpop.xlane.xlu1 %1716  ;;  %v1755_v51 = vmul.f32 %v3146_v46, %v3146_v46  ;;  %v1754_v18 = vmul.f32 %v3148_v8, %v3148_v8 }
 0x511   : > { %v1753_v3 = vmul.f32 %v3150_v20, %v3150_v20 }
 0x512   : > { %v1797_v60 = vperm.slane %v1755_v51, %v3383_v52  ;;  %v1796_v1 = vperm.slane %v1754_v18, %v3384_v27 }
 0x513   : > { %v1794_v56 = vperm.slane %v1753_v3, %v3383_v52 }
 0x514   : > { %v1798_v24 = vsel %vm761_vm0, %v1797_v60, %v1796_v1 }
 0x515   : > { %v1795_v32 = vsel %vm761_vm0, %v1794_v56, %v1793_v23 }
 0x516   : > { %v1820_v19 = vsel %vm790_vm1, %v1795_v32, %v1792_v55 }
 0x517   : > { %v3152_v44 = vpop.xlane.xlu2 %1726  ;;  %v3154_v57 = vpop.xlane.xlu0 %1724  ;;  %v1821_v31 = vsel %vm792_vm2, %v1798_v24, %v1820_v19 }
 0x518   : > { %v3156_v47 = vpop.xlane.xlu1 %1722  ;;  %v1757_v29 = vmul.f32 %v3154_v57, %v3154_v57  ;;  %v1758_v16 = vmul.f32 %v3152_v44, %v3152_v44 }
 0x519   : > { %v1756_v17 = vmul.f32 %v3156_v47, %v3156_v47 }
 0x51a   : > { %v1800_v13 = vperm.slane %v1757_v29, %v3383_v52  ;;  %v1802_v45 = vperm.slane %v1758_v16, %v3384_v27 }
 0x51b   : > { %v1799_v10 = vperm.slane %v1756_v17, %v3384_v27 }
 0x51d   : > { %v1801_v37 = vsel %vm761_vm0, %v1800_v13, %v1799_v10 }
 0x51e   : > { %v1822_v50 = vsel %vm794_vm3, %v1801_v37, %v1821_v31 }
 0x51f   : > { %v3158_v12 = vpop.xlane.xlu2 %1732  ;;  %v3160_v21 = vpop.xlane.xlu0 %1730 }
 0x520   : > { %v3164_v14 = vpop.xlane.xlu1 %1728  ;;  %v1761_v28 = vmul.f32 %v3158_v12, %v3158_v12  ;;  %v1760_v42 = vmul.f32 %v3160_v21, %v3160_v21 }
 0x521   : > { %v1759_v43 = vmul.f32 %v3164_v14, %v3164_v14 }
 0x522   : > { %v1806_v53 = vperm.slane %v1761_v28, %v3383_v52  ;;  %v1805_v4 = vperm.slane %v1760_v42, %v3384_v27 }
 0x523   : > { %v1803_v59 = vperm.slane %v1759_v43, %v3383_v52 }
 0x524   : > { %v1807_v34 = vsel %vm761_vm0, %v1806_v53, %v1805_v4 }
 0x525   : > { %v1804_v49 = vsel %vm761_vm0, %v1803_v59, %v1802_v45 }
 0x526   : > { %v1823_v0 = vsel %vm796_vm4, %v1804_v49, %v1822_v50 }
 0x527   : > { %v3186_v58 = vpop.xlane.xlu0 %1736  ;;  %v3193_v48 = vpop.xlane.xlu2 %1738  ;;  %v1824_v30 = vsel %vm798_vm5, %v1807_v34, %v1823_v0 }
 0x528   : > { %v3195_v25 = vpop.xlane.xlu1 %1734  ;;  %v1763_v38 = vmul.f32 %v3186_v58, %v3186_v58  ;;  %v1764_v63 = vmul.f32 %v3193_v48, %v3193_v48 }
 0x529   : > { %v1762_v15 = vmul.f32 %v3195_v25, %v3195_v25 }
 0x52a   : > { %v1809_v7 = vperm.slane %v1763_v38, %v3383_v52  ;;  %v1811_v5 = vperm.slane %v1764_v63, %v3384_v27 }
 0x52b   : > { %v1808_v54 = vperm.slane %v1762_v15, %v3384_v27 }
 0x52d   : > { %v1810_v22 = vsel %vm761_vm0, %v1809_v7, %v1808_v54 }
 0x52e   : > { %v1825_v36 = vsel %vm800_vm6, %v1810_v22, %v1824_v30 }
 0x52f   : > { %v3220_v2 = vpop.xlane.xlu0 %1742  ;;  %v3230_v35 = vpop.xlane.xlu2 %1744 }
 0x530   : > { %v3223_v41 = vpop.xlane.xlu1 %1740  ;;  %v1767_v3 = vmul.f32 %v3230_v35, %v3230_v35  ;;  %v1766_v39 = vmul.f32 %v3220_v2, %v3220_v2 }
 0x531   : > { %v1765_v26 = vmul.f32 %v3223_v41, %v3223_v41 }
 0x532   : > { %v1815_v23 = vperm.slane %v1767_v3, %v3383_v52  ;;  %v1814_v43 = vperm.slane %v1766_v39, %v3384_v27 }
 0x533   : > { %v1812_v62 = vperm.slane %v1765_v26, %v3383_v52 }
 0x534   : > { %v1816_v1 = vsel %vm761_vm0, %v1815_v23, %v1814_v43 }
 0x535   : > { %v1813_v6 = vsel %vm761_vm0, %v1812_v62, %v1811_v5 }
 0x536   : > { %v1826_v51 = vsel %vm802_vm7, %v1813_v6, %v1825_v36 }
 0x537   : > { %v3243_v18 = vpop.xlane.xlu0 %1748  ;;  %v1830_v56 = vsel %vm807_vm8, %v1826_v51, 0.0 }
 0x538   : > { %v1769_v29 = vmul.f32 %v3243_v18, %v3243_v18  ;;  %1831 = vadd.xlane.f32.xlu2 %v1830_v56  ;;  %v3248_v17 = vpop.xlane.xlu1 %1746 }
 0x539   : > { %v1768_v11 = vmul.f32 %v3248_v17, %v3248_v17 }
 0x53a   : > { %v1818_v33 = vperm.slane %v1769_v29, %v3383_v52 }
 0x53b   : > { %v1817_v60 = vperm.slane %v1768_v11, %v3384_v27 }
 0x53d   : > { %v1819_v32 = vsel %vm761_vm0, %v1818_v33, %v1817_v60 }
 0x53e   : > { %v1827_v16 = vsel %vm790_vm1, %v1819_v32, %v1816_v1 }
 0x53f   : > { %v1833_v13 = vsel %vm3385_vm9, %v1827_v16, 0.0 }
 0x540   : > { %1834 = vadd.xlane.f32.xlu1 %v1833_v13 }
 0x5ab   : > { %v1832_v10 = vpop.xlane.xlu2 %1831 }
 0x5ac   : > { %v1842_v28 = vadd.f32 1e-09, %v1832_v10  ;;  %v1836_v42 = vadd.f32 1.0, %v1832_v10 }
 0x5ae   : > { %2237 = vrsqrt.f32 %v1842_v28  ;;  %vm1850_vm11 = vweird.f32 %v1842_v28 }
 0x5af   : > { %2239 = vrcp.f32 %v1836_v42 }
 0x5b3   : > { %v1835_v59 = vpop.xlane.xlu1 %1834 }
 0x5b4   : > { %v1843_v38 = vadd.f32 1e-09, %v1835_v59  ;;  %v2238_v15 = vpop.eup %2237  ;;  %v1837_v45 = vadd.f32 1.0, %v1835_v59 }
 0x5b5   : > { %v1845_v55 = vmul.f32 %v2238_v15, %v1842_v28  ;;  %v2240_v37 = vpop.eup %2239  ;;  %vm1851_vm10 = vweird.f32 %v2238_v15 }
 0x5b6   : > { %2241 = vrsqrt.f32 %v1843_v38  ;;  %v1840_v54 = vmul.f32 %v2240_v37, %v1832_v10  ;;  %vm1852_vm12 = vmor %vm1850_vm11, %vm1851_vm10  ;;  %vm1860_vm14 = vweird.f32 %v1843_v38 }
 0x5b7   : > { %v1846_v24 = vmul.f32 %v2238_v15, %v1845_v55  ;;  %2243 = vrcp.f32 %v1837_v45 }
 0x5b9   : > { %v1847_v19 = vmul.f32 0.5, %v1846_v24 }
 0x5bb   : > { %v1848_v53 = vsub.f32 1.5, %v1847_v19 }
 0x5bc   : > { %v2242_v4 = vpop.eup %2241 }
 0x5bd   : > { %v1849_v49 = vmul.f32 %v2238_v15, %v1848_v53  ;;  %v1855_v7 = vmul.f32 %v2242_v4, %v1843_v38  ;;  %v2244_v22 = vpop.eup %2243  ;;  %vm1861_vm13 = vweird.f32 %v2242_v4 }
 0x5be   : > { %v1841_v39 = vmul.f32 %v2244_v22, %v1835_v59  ;;  %vm1862_vm15 = vmor %vm1860_vm14, %vm1861_vm13 }
 0x5bf   : > { %v1853_v63 = vsel %vm1852_vm12, %v2238_v15, %v1849_v49  ;;  %v1856_v31 = vmul.f32 %v2242_v4, %v1855_v7 }
 0x5c0   : > { %v1864_v50 = vmul.f32 %v1853_v63, %v1840_v54 }
 0x5c1   : > { %v1857_v26 = vmul.f32 0.5, %v1856_v31 }
 0x5c2   : > { %v1868_v34 = vperm.slane %v1864_v50, 0  ;;  %v1869_v0 = vperm.slane %v1864_v50, 1  ;;  %v1871_v51 = vperm.slane %v1864_v50, 3  ;;  %v1874_v1 = vperm.slane %v1864_v50, 6 }
 0x5c3   : > { %v1858_v5 = vsub.f32 1.5, %v1857_v26  ;;  %v1873_v32 = vperm.slane %v1864_v50, 5  ;;  %v1875_v16 = vperm.slane %v1864_v50, 7 }
 0x5c4   : > { %v1888_v62 = vmul.f32 %v1868_v34, %v3144_v40  ;;  %v1890_v30 = vmul.f32 %v1869_v0, %v3140_v9  ;;  %v1891_v29 = vmul.f32 %v1869_v0, %v3150_v20  ;;  %v1894_v23 = vmul.f32 %v1871_v51, %v3156_v47 }
 0x5c5   : > { %v1859_v3 = vmul.f32 %v2242_v4, %v1858_v5  ;;  %v1870_v9 = vperm.slane %v1864_v50, 2  ;;  %v1872_v40 = vperm.slane %v1864_v50, 4  ;;  %v1889_v60 = vmul.f32 %v1868_v34, %v3142_v61 }
 0x5c6   : > { %1929 = vperm.xlu0 %2176, %v1888_v62   ;;  %1935 = vperm.xlu1 %2175, %v1890_v30   ;;  %v1900_v47 = vmul.f32 %v1874_v1, %v3195_v25  ;;  %v1895_v61 = vmul.f32 %v1871_v51, %v3154_v57 }
 0x5c7   : > { %v1863_v6 = vsel %vm1862_vm15, %v2242_v4, %v1859_v3  ;;  %v1893_v11 = vmul.f32 %v1870_v9, %v3146_v46  ;;  %v1897_v33 = vmul.f32 %v1872_v40, %v3164_v14  ;;  %v1896_v20 = vmul.f32 %v1872_v40, %v3152_v44 }
 0x5c8   : > { %v1865_v36 = vmul.f32 %v1863_v6, %v1841_v39  ;;  %v1899_v46 = vmul.f32 %v1873_v32, %v3158_v12  ;;  %v1903_v14 = vmul.f32 %v1875_v16, %v3223_v41  ;;  %v1902_v44 = vmul.f32 %v1875_v16, %v3193_v48 }
 0x5c9   : > { %v1901_v12 = vmul.f32 %v1874_v1, %v3186_v58 }
 0x5ca   : > { %v1876_v56 = vperm.slane %v1865_v36, 0  ;;  %v1877_v13 = vperm.slane %v1865_v36, 1 }
 0x5cc   : > { %v1904_v43 = vmul.f32 %v1876_v56, %v3220_v2  ;;  %v1892_v2 = vmul.f32 %v1870_v9, %v3148_v8  ;;  %v1906_v25 = vmul.f32 %v1877_v13, %v3248_v17  ;;  %v1898_v8 = vmul.f32 %v1873_v32, %v3160_v21 }
 0x5cd   : > { %v1905_v10 = vmul.f32 %v1876_v56, %v3230_v35  ;;  %v1907_v57 = vmul.f32 %v1877_v13, %v3243_v18 }
 0x5ce   : > { %1938 = vperm.xlu0 %2176, %v1891_v29   ;;  %1947 = vperm.xlu1 %2175, %v1894_v23  }
 0x5cf   : > { %1977 = vperm.xlu2 %2174, %v1904_v43  }
 0x5d6   : > { %1944 = vperm.xlu0 %2176, %v1893_v11   ;;  %1956 = vperm.xlu1 %2175, %v1897_v33  }
 0x5d7   : > { %1932 = vperm.xlu2 %2174, %v1889_v60  }
 0x5de   : > { %1953 = vperm.xlu0 %2176, %v1896_v20   ;;  %1965 = vperm.xlu1 %2175, %v1900_v47  }
 0x5df   : > { %1941 = vperm.xlu2 %2174, %v1892_v2  }
 0x5e6   : > { %1962 = vperm.xlu0 %2176, %v1899_v46   ;;  %1974 = vperm.xlu1 %2175, %v1903_v14  }
 0x5e7   : > { %1950 = vperm.xlu2 %2174, %v1895_v61  }
 0x5ee   : > { %1971 = vperm.xlu0 %2176, %v1902_v44   ;;  %1983 = vperm.xlu1 %2175, %v1906_v25  }
 0x5ef   : > { %1959 = vperm.xlu2 %2174, %v1898_v8  }
 0x5f6   : > { %1980 = vperm.xlu0 %2176, %v1905_v10  }
 0x5f7   : > { %1968 = vperm.xlu2 %2174, %v1901_v12  }
 0x5ff   : > { %1986 = vperm.xlu2 %2174, %v1907_v57  }
 0x629   : > { %v3280_v41 = vpop.permute.xlu2 %1977 }
 0x62a   : > { %v2012_v46 = vperm.slane %v3280_v41, %v3384_v27 }
 0x631   : > { %v1933_v28 = vpop.permute.xlu2 %1932 }
 0x632   : > { %v1989_v4 = vperm.slane %v1933_v28, %v3383_v52 }
 0x638   : > { %v1930_v48 = vpop.permute.xlu0 %1929  ;;  %v1936_v42 = vpop.permute.xlu1 %1935 }
 0x639   : > { %v1942_v17 = vpop.permute.xlu2 %1941  ;;  %v1988_v45 = vperm.slane %v1930_v48, %v3384_v27  ;;  %v1991_v37 = vperm.slane %v1936_v42, %v3384_v27 }
 0x63a   : > { %v1994_v53 = vperm.slane %v1942_v17, %v3384_v27 }
 0x63b   : > { %v1990_v31 = vsel %vm761_vm0, %v1989_v4, %v1988_v45 }
 0x640   : > { %v1939_v21 = vpop.permute.xlu0 %1938  ;;  %v1948_v59 = vpop.permute.xlu1 %1947 }
 0x641   : > { %v1951_v38 = vpop.permute.xlu2 %1950  ;;  %v1992_v19 = vperm.slane %v1939_v21, %v3383_v52  ;;  %v1997_v26 = vperm.slane %v1948_v59, %v3384_v27 }
 0x642   : > { %v1998_v50 = vperm.slane %v1951_v38, %v3383_v52 }
 0x643   : > { %v1993_v49 = vsel %vm761_vm0, %v1992_v19, %v1991_v37 }
 0x644   : > { %v2018_v0 = vsel %vm790_vm1, %v1993_v49, %v1990_v31  ;;  %v1999_v6 = vsel %vm761_vm0, %v1998_v50, %v1997_v26 }
 0x648   : > { %v1945_v15 = vpop.permute.xlu0 %1944  ;;  %v1957_v55 = vpop.permute.xlu1 %1956 }
 0x649   : > { %v1960_v58 = vpop.permute.xlu2 %1959  ;;  %v1995_v18 = vperm.slane %v1945_v15, %v3383_v52  ;;  %v2001_v22 = vperm.slane %v1957_v55, %v3383_v52 }
 0x64a   : > { %v2003_v30 = vperm.slane %v1960_v58, %v3384_v27 }
 0x64b   : > { %v1996_v7 = vsel %vm761_vm0, %v1995_v18, %v1994_v53 }
 0x64c   : > { %v2019_v62 = vsel %vm792_vm2, %v1996_v7, %v2018_v0  ;;  %vm3386_vm2 = vmmov %vm3385_vm9 }
 0x64d   : > { %v2020_v51 = vsel %vm794_vm3, %v1999_v6, %v2019_v62 }
 0x650   : > { %v1954_v35 = vpop.permute.xlu0 %1953  ;;  %v1966_v24 = vpop.permute.xlu1 %1965 }
 0x651   : > { %v2000_v54 = vperm.slane %v1954_v35, %v3384_v27  ;;  %v1969_v3 = vpop.permute.xlu2 %1968  ;;  %v2006_v29 = vperm.slane %v1966_v24, %v3384_v27 }
 0x652   : > { %v2007_v56 = vperm.slane %v1969_v3, %v3383_v52 }
 0x653   : > { %v2002_v39 = vsel %vm761_vm0, %v2001_v22, %v2000_v54 }
 0x654   : > { %v2021_v23 = vsel %vm796_vm4, %v2002_v39, %v2020_v51  ;;  %v2008_v33 = vsel %vm761_vm0, %v2007_v56, %v2006_v29 }
 0x658   : > { %v1963_v63 = vpop.permute.xlu0 %1962  ;;  %v1975_v5 = vpop.permute.xlu1 %1974 }
 0x659   : > { %v2004_v34 = vperm.slane %v1963_v63, %v3383_v52  ;;  %v2010_v40 = vperm.slane %v1975_v5, %v3383_v52  ;;  %v1987_v2 = vpop.permute.xlu2 %1986 }
 0x65a   : > { %v2016_v14 = vperm.slane %v1987_v2, %v3383_v52 }
 0x65b   : > { %v2005_v36 = vsel %vm761_vm0, %v2004_v34, %v2003_v30 }
 0x65c   : > { %v2022_v43 = vsel %vm798_vm5, %v2005_v36, %v2021_v23 }
 0x65d   : > { %v2023_v1 = vsel %vm800_vm6, %v2008_v33, %v2022_v43 }
 0x660   : > { %v1972_v9 = vpop.permute.xlu0 %1971  ;;  %v1984_v47 = vpop.permute.xlu1 %1983 }
 0x661   : > { %v2009_v11 = vperm.slane %v1972_v9, %v3384_v27  ;;  %v2015_v32 = vperm.slane %v1984_v47, %v3384_v27 }
 0x663   : > { %v2011_v60 = vsel %vm761_vm0, %v2010_v40, %v2009_v11  ;;  %v2017_v13 = vsel %vm761_vm0, %v2016_v14, %v2015_v32 }
 0x664   : > { %v2024_v20 = vsel %vm802_vm7, %v2011_v60, %v2023_v1 }
 0x665   : > { %2028 = vst.msk [vmem:[%s179_s29] sm:$0xff] %vm807_vm8, %v2024_v20 }
 0x668   : > { %v1981_v16 = vpop.permute.xlu0 %1980 }
 0x669   : > { %v2013_v61 = vperm.slane %v1981_v16, %v3383_v52 }
 0x66b   : > { %v2014_v44 = vsel %vm761_vm0, %v2013_v61, %v2012_v46 }
 0x66c   : > { %v2025_v25 = vsel %vm790_vm1, %v2017_v13, %v2014_v44 }
 0x66d   : > { %2029 = vst.msk [vmem:[%s179_s29 + $0x8] sm:$0x3] %vm3386_vm2, %v2025_v25 }
 0x66e PF: > { %p13_p3 = scmp.ge.s32.totalorder %s2400_s22, 4   ;;  %s3387_s9 = smov %s2335_s10 }
 0x66f   : > { %s3388_s10 = smov %s2339_s11  ;;  %s3389_s11 = smov %s2410_s25 }
 0x670   : > { %s3390_s12 = smov %s2400_s22  ;;  %15 = sbr.rel (!%p13_p3) target bundleno = 4 (0x4), region = 79 }
 0x675   :  { %2051 = vsyncpa [#allocation3], 1 }
 0x676   :  { %2053 = vsyncpa [#allocation3 + $0x1], 1 }
 0x677   :  { %2054 = vsyncpa [#allocation5], 1 }

</bundles_post_ra>
